<compile_context>
chip_gen: v7x
topology: tpu7x:2x2x1
jax: 0.10.0
libtpu: 0.0.40
codegen_flags: <defaults>
</compile_context>

<pallas_src>
import functools

import jax
import jax.numpy as jnp
from jax.experimental import pallas as pl
from jax.experimental.pallas import tpu as pltpu

_C = 1e-5     # SSIM stabilisation constant (self.C in the torch module)
_LANE = 128


def ssim3d_kernel(x_ref, y_ref, out_ref,
                  sx_ref, sy_ref, sxx_ref, syy_ref, sxy_ref, chsum_ref,
                  *, n_sp, Cch, n_pad):
    """One grid step: a (Bt, C, TP, 128) lane-dense pixel tile of a batch tile.

    Grid = (batch tiles [parallel], pixel tiles [arbitrary / reduction]).
    Lane-wide spatial raw moments and the channel-SSIM running sum live in
    VMEM scratch; the (Bt, 1, C) output block is written on the last pixel tile.
    """
    p = pl.program_id(1)

    @pl.when(p == 0)
    def _init():
        sx_ref[...] = jnp.zeros_like(sx_ref)
        sy_ref[...] = jnp.zeros_like(sy_ref)
        sxx_ref[...] = jnp.zeros_like(sxx_ref)
        syy_ref[...] = jnp.zeros_like(syy_ref)
        sxy_ref[...] = jnp.zeros_like(sxy_ref)
        chsum_ref[...] = jnp.zeros_like(chsum_ref)

    x = x_ref[...].astype(jnp.float32)          # (Bt, C, TP, L)
    y = y_ref[...].astype(jnp.float32)

    # Raw products computed ONCE and shared by the spatial moments and the
    # channel-axis variances (VALU-bound: this is the main op-count saving).
    x2 = x * x
    y2 = y * y
    xy = x * y

    # ---- spatial raw moments: sublane-direction adds only (pure VPU), into
    #      lane-wide accumulators -> no per-tile XLU reduce, no masked stores.
    sx_ref[...] += jnp.sum(x, axis=-2)
    sy_ref[...] += jnp.sum(y, axis=-2)
    sxx_ref[...] += jnp.sum(x2, axis=-2)
    syy_ref[...] += jnp.sum(y2, axis=-2)
    sxy_ref[...] += jnp.sum(xy, axis=-2)

    # ---- channel-axis SSIM per pixel, from the SAME raw products ----
    nc = float(Cch)
    inv_nc = 1.0 / nc
    # TODO(synk): Cch == 1 divides by zero (inf/nan), exactly like the torch
    # reference; we reproduce that behaviour instead of guarding it.
    inv_cm1 = (1.0 / (nc - 1.0)) if Cch > 1 else float("inf")

    sum_x = jnp.sum(x, axis=1)                  # (Bt, TP, L)
    sum_y = jnp.sum(y, axis=1)
    sum_x2 = jnp.sum(x2, axis=1)
    sum_y2 = jnp.sum(y2, axis=1)
    sum_xy = jnp.sum(xy, axis=1)

    xm = sum_x * inv_nc
    ym = sum_y * inv_nc
    # Clamp the raw-moment cancellation at 0; the zero-variance flag below is
    # then a "raw <= 0" test (slight semantic difference vs. the reference's
    # exact centered std == 0 test -- only matters for channel-constant pixels).
    xvar = jnp.maximum(sum_x2 - sum_x * xm, 0.0) * inv_cm1
    yvar = jnp.maximum(sum_y2 - sum_y * ym, 0.0) * inv_cm1
    cov = (sum_xy - sum_x * ym) * inv_cm1

    mm = jnp.minimum(xm, ym) - 0.1
    a = xm - mm
    b = ym - mm

    std_prod = jnp.sqrt(xvar * yvar)            # the ONLY per-pixel sqrt (EUP)
    flag = jnp.logical_and(xvar == 0.0, yvar == 0.0).astype(jnp.float32)
    num = (2.0 * a * b + _C) * (2.0 * std_prod + _C) * (cov + (0.5 * _C) * flag)
    den = (a * a + b * b + _C) * (xvar + yvar + _C) * (std_prod + 0.5 * _C)
    ssim_ch = num / den                         # the ONLY per-pixel divide

    # Zero-padded pixels give ssim_ch == 1.0 exactly (all-zero channels ->
    # num == den bit-for-bit), so no per-tile mask is needed; the padded
    # contribution (n_pad pixels) is subtracted analytically at finalize.
    chsum_ref[...] += jnp.sum(ssim_ch, axis=-2)   # (Bt, L)

    # ---- finalize on the last pixel tile ----
    @pl.when(p == pl.num_programs(1) - 1)
    def _finalize():
        n = float(n_sp)
        inv_n = 1.0 / n
        # TODO(synk): H*W == 1 divides by zero (inf/nan), like the torch ref.
        inv_nm1 = (1.0 / (n - 1.0)) if n_sp > 1 else float("inf")

        # Single cross-lane (XLU) reduce per accumulator, once per batch tile.
        Sx = jnp.sum(sx_ref[...], axis=-1)        # (Bt, C)
        Sy = jnp.sum(sy_ref[...], axis=-1)
        Sxx = jnp.sum(sxx_ref[...], axis=-1)
        Syy = jnp.sum(syy_ref[...], axis=-1)
        Sxy = jnp.sum(sxy_ref[...], axis=-1)

        xmean = Sx * inv_n
        ymean = Sy * inv_n
        # TODO(synk): single-pass raw moments can cancel catastrophically for
        # very large H*W with non-small means; the torch reference is two-pass
        # centered (Chan's parallel-variance combine would fix this cheaply).
        xv = jnp.maximum(Sxx - Sx * xmean, 0.0) * inv_nm1
        yv = jnp.maximum(Syy - Sy * ymean, 0.0) * inv_nm1
        cv = (Sxy - Sx * ymean) * inv_nm1
        xs = jnp.sqrt(xv)
        ys = jnp.sqrt(yv)

        mmn = jnp.minimum(xmean, ymean) - 0.1
        aa = xmean - mmn
        bb = ymean - mmn
        l_sp = (2.0 * aa * bb + _C) / (aa * aa + bb * bb + _C)
        c_sp = (2.0 * xs * ys + _C) / (xv + yv + _C)
        fl = jnp.logical_and(xs <= 0.0, ys <= 0.0).astype(jnp.float32)
        s_sp = (cv + (0.5 * _C) * fl) / (xs * ys + 0.5 * _C)
        ssim_sp = l_sp * c_sp * s_sp              # (Bt, C)

        ch_sum = jnp.sum(chsum_ref[...], axis=-1) - float(n_pad)   # (Bt,)
        ch_mean = ch_sum * inv_n
        out = 0.5 * (ssim_sp + ch_mean[:, None])  # (Bt, C)
        out_ref[...] = out[:, None, :].astype(out_ref.dtype)


def ssim3d(x, y):
    """Pallas ssim3d forward: x, y (B, C, H, W) -> (B, C) float32."""
    assert x.shape == y.shape
    B, Cch, H, W = x.shape
    flat = H * W
    rows = pl.cdiv(flat, _LANE)                  # lane-dense rows of 128 pixels
    itemsize = x.dtype.itemsize
    sub_mult = {4: 8, 2: 16, 1: 32}.get(itemsize, 8)   # dtype sublane packing

    # --- generation-aware budgets (do not hard-code v7x's full 64 MiB) ---
    try:
        vmem_cap = int(pltpu.get_tpu_info().vmem_capacity_bytes)
    except Exception:
        vmem_cap = 128 * 1024 * 1024
    try:
        kind = jax.devices()[0].device_kind.lower()
    except Exception:
        kind = ""
    multi_tc = ("7" in kind) or ("v4" in kind)   # chips with 2 TCs / megacore
    vmem_limit = max(16 << 20, min(48 << 20, (vmem_cap * 3) // 4))
    block_cap = (1 << 20) if vmem_cap <= (64 << 20) else (2 << 20)

    # --- batch packing: amortize the ~0.35 us per-grid-step overhead.  On
    #     single-TC chips pack up to the whole batch; on 2-TC parts keep >= 2
    #     parallel grid steps for the second TensorCore. ---
    per_batch_bytes = Cch * rows * _LANE * itemsize
    bt_cap = max(B // 2, 1) if (multi_tc and B >= 2) else B
    bt = 1
    for cand in range(bt_cap, 0, -1):
        if B % cand == 0 and cand * per_batch_bytes <= 8 * 1024 * 1024:
            bt = cand
            break
    # TODO(synk): for B == 1 on 2-TC chips the second core idles; a pixel-axis
    # core split (partial moments combined in the wrapper) would recover ~2x.

    # --- pixel tiling: keep each input block <= block_cap so double-buffered
    #     inputs + elementwise temporaries stay well inside VMEM. ---
    bytes_per_row = bt * Cch * _LANE * itemsize
    tp_max = max(sub_mult, block_cap // bytes_per_row)
    if rows <= tp_max:
        tp = rows
        rows_padded = rows
    else:
        tp = (tp_max // sub_mult) * sub_mult
        rows_padded = pl.cdiv(rows, tp) * tp

    padded_flat = rows_padded * _LANE
    n_pad = padded_flat - flat

    def lane_dense(t):
        t = t.reshape(B, Cch, flat)
        if n_pad:
            t = jnp.pad(t, ((0, 0), (0, 0), (0, n_pad)))
        return t.reshape(B, Cch, rows_padded, _LANE)

    xr = lane_dense(x)
    yr = lane_dense(y)

    kernel = functools.partial(ssim3d_kernel, n_sp=flat, Cch=Cch, n_pad=n_pad)
    out = pl.pallas_call(
        kernel,
        out_shape=jax.ShapeDtypeStruct((B, 1, Cch), jnp.float32),
        grid=(B // bt, rows_padded // tp),
        in_specs=[
            pl.BlockSpec((bt, Cch, tp, _LANE), lambda b, p: (b, 0, p, 0)),
            pl.BlockSpec((bt, Cch, tp, _LANE), lambda b, p: (b, 0, p, 0)),
        ],
        out_specs=pl.BlockSpec((bt, 1, Cch), lambda b, p: (b, 0, 0)),
        scratch_shapes=[
            pltpu.VMEM((bt, Cch, _LANE), jnp.float32),   # S_x   (lane-wide)
            pltpu.VMEM((bt, Cch, _LANE), jnp.float32),   # S_y
            pltpu.VMEM((bt, Cch, _LANE), jnp.float32),   # S_xx
            pltpu.VMEM((bt, Cch, _LANE), jnp.float32),   # S_yy
            pltpu.VMEM((bt, Cch, _LANE), jnp.float32),   # S_xy
            pltpu.VMEM((bt, _LANE), jnp.float32),        # channel-SSIM running sum
        ],
        compiler_params=pltpu.CompilerParams(
            dimension_semantics=("parallel", "arbitrary"),
            vmem_limit_bytes=vmem_limit,
        ),
    )(xr, yr)
    return out[:, 0, :]


# ----------------------- plain-JAX reference (mirrors torch) -----------------
def _ref_ssim(x, y, dims):
    n = 1.0
    for d in dims:
        n *= x.shape[d]
    sim = lambda a, b: (2.0 * a * b + _C) / (a * a + b * b + _C)
    xm = jnp.mean(x, axis=dims, keepdims=True)
    ym = jnp.mean(y, axis=dims, keepdims=True)
    xstd = jnp.sqrt(jnp.sum((x - xm) ** 2, axis=dims, keepdims=True) / (n - 1.0))
    ystd = jnp.sqrt(jnp.sum((y - ym) ** 2, axis=dims, keepdims=True) / (n - 1.0))
    mm = jnp.minimum(xm, ym) - 0.1
    l = sim(xm - mm, ym - mm)
    c = sim(xstd, ystd)
    cov = jnp.sum((x - xm) * (y - ym), axis=dims, keepdims=True) / (n - 1.0)
    flag = jnp.logical_and(xstd == 0.0, ystd == 0.0).astype(jnp.float32)
    s = (cov + 0.5 * _C * flag) / (xstd * ystd + 0.5 * _C)
    return jnp.squeeze(l * c * s, axis=dims)


def _ref_ssim3d(x, y):
    sp = _ref_ssim(x, y, (-1, -2))                                 # (B, C)
    ch = _ref_ssim(x, y, (-3,)).mean(axis=(-1, -2))[:, None]       # (B, 1)
    return 0.5 * (sp + jnp.broadcast_to(ch, sp.shape))


if __name__ == "__main__":
    key = jax.random.PRNGKey(0)
    k1, k2, k3, k4, k5, k6 = jax.random.split(key, 6)

    # Case 1: the module's nominal small shape (H*W is a multiple of 128).
    B, Cch, H, W = 2, 4, 16, 16
    x = jax.random.normal(k1, (B, Cch, H, W), dtype=jnp.float32)
    y = jax.random.normal(k2, (B, Cch, H, W), dtype=jnp.float32)
    out = jax.block_until_ready(ssim3d(x, y))
    ref = _ref_ssim3d(x, y)
    assert out.shape == (B, Cch), out.shape
    assert jnp.allclose(out, ref, rtol=1e-4, atol=1e-4), (out, ref)

    # Case 2: odd sizes exercising the zero-padding / analytic-correction path.
    B2, C2, H2, W2 = 1, 3, 7, 9
    x2 = jax.random.normal(k3, (B2, C2, H2, W2), dtype=jnp.float32)
    y2 = jax.random.normal(k4, (B2, C2, H2, W2), dtype=jnp.float32)
    out2 = jax.block_until_ready(ssim3d(x2, y2))
    ref2 = _ref_ssim3d(x2, y2)
    assert out2.shape == (B2, C2), out2.shape
    assert jnp.allclose(out2, ref2, rtol=1e-4, atol=1e-4), (out2, ref2)

    # Case 3: bf16 inputs (narrow dtype stays narrow in HBM; cast in-kernel).
    B3, C3, H3, W3 = 2, 4, 32, 64
    x3 = jax.random.normal(k5, (B3, C3, H3, W3), dtype=jnp.float32).astype(jnp.bfloat16)
    y3 = jax.random.normal(k6, (B3, C3, H3, W3), dtype=jnp.float32).astype(jnp.bfloat16)
    out3 = jax.block_until_ready(ssim3d(x3, y3))
    ref3 = _ref_ssim3d(x3.astype(jnp.float32), y3.astype(jnp.float32))
    assert out3.shape == (B3, C3), out3.shape
    assert jnp.allclose(out3, ref3, rtol=1e-3, atol=1e-3), (out3, ref3)

    print("KERNEL_OK")
</pallas_src>

<mosaic_0001>
module attributes {stable_mosaic.version = 11 : i64} {
  func.func @ssim3d_kernel(%arg0: i32, %arg1: i32, %arg2: memref<2x4x2x128xf32, #tpu.memory_space<vmem>>, %arg3: memref<2x4x2x128xf32, #tpu.memory_space<vmem>>, %arg4: memref<2x1x4xf32, #tpu.memory_space<vmem>>, %arg5: memref<2x4x128xf32, #tpu.memory_space<vmem>>, %arg6: memref<2x4x128xf32, #tpu.memory_space<vmem>>, %arg7: memref<2x4x128xf32, #tpu.memory_space<vmem>>, %arg8: memref<2x4x128xf32, #tpu.memory_space<vmem>>, %arg9: memref<2x4x128xf32, #tpu.memory_space<vmem>>, %arg10: memref<2x128xf32, #tpu.memory_space<vmem>>) attributes {dimension_semantics = [#tpu.dimension_semantics<parallel>, #tpu.dimension_semantics<arbitrary>], iteration_bounds = array<i64: 1, 1>, scalar_prefetch = 0 : i64, scratch_operands = 6 : i64, tpu.core_type = #tpu.core_type<tc>, window_params = [{transform_indices = @transform_0, window_bounds = array<i64: 2, 4, 2, 128>}, {transform_indices = @transform_1, window_bounds = array<i64: 2, 4, 2, 128>}, {transform_indices = @transform_2, window_bounds = array<i64: 2, 1, 4>}]} {
    %c0_i32 = arith.constant 0 : i32
    %0 = arith.cmpi eq, %arg1, %c0_i32 : i32
    %1 = arith.extui %0 : i1 to i32
    %c0_i32_0 = arith.constant 0 : i32
    %2 = arith.cmpi ne, %1, %c0_i32_0 : i32
    scf.if %2 {
      %cst_72 = arith.constant 0.000000e+00 : f32
      %101 = vector.broadcast %cst_72 : f32 to vector<2x4x128xf32>
      %c0_73 = arith.constant 0 : index
      %c0_74 = arith.constant 0 : index
      %c0_75 = arith.constant 0 : index
      %102 = vector.load %arg5[%c0_73, %c0_74, %c0_75] : memref<2x4x128xf32, #tpu.memory_space<vmem>>, vector<2x4x128xf32>
      tpu.vector_store %arg5[%c0_73, %c0_74, %c0_75], %101 {strides = array<i32>} : memref<2x4x128xf32, #tpu.memory_space<vmem>>, vector<2x4x128xf32>,
      %cst_76 = arith.constant 0.000000e+00 : f32
      %103 = vector.broadcast %cst_76 : f32 to vector<2x4x128xf32>
      %c0_77 = arith.constant 0 : index
      %c0_78 = arith.constant 0 : index
      %c0_79 = arith.constant 0 : index
      %104 = vector.load %arg6[%c0_77, %c0_78, %c0_79] : memref<2x4x128xf32, #tpu.memory_space<vmem>>, vector<2x4x128xf32>
      tpu.vector_store %arg6[%c0_77, %c0_78, %c0_79], %103 {strides = array<i32>} : memref<2x4x128xf32, #tpu.memory_space<vmem>>, vector<2x4x128xf32>,
      %cst_80 = arith.constant 0.000000e+00 : f32
      %105 = vector.broadcast %cst_80 : f32 to vector<2x4x128xf32>
      %c0_81 = arith.constant 0 : index
      %c0_82 = arith.constant 0 : index
      %c0_83 = arith.constant 0 : index
      %106 = vector.load %arg7[%c0_81, %c0_82, %c0_83] : memref<2x4x128xf32, #tpu.memory_space<vmem>>, vector<2x4x128xf32>
      tpu.vector_store %arg7[%c0_81, %c0_82, %c0_83], %105 {strides = array<i32>} : memref<2x4x128xf32, #tpu.memory_space<vmem>>, vector<2x4x128xf32>,
      %cst_84 = arith.constant 0.000000e+00 : f32
      %107 = vector.broadcast %cst_84 : f32 to vector<2x4x128xf32>
      %c0_85 = arith.constant 0 : index
      %c0_86 = arith.constant 0 : index
      %c0_87 = arith.constant 0 : index
      %108 = vector.load %arg8[%c0_85, %c0_86, %c0_87] : memref<2x4x128xf32, #tpu.memory_space<vmem>>, vector<2x4x128xf32>
      tpu.vector_store %arg8[%c0_85, %c0_86, %c0_87], %107 {strides = array<i32>} : memref<2x4x128xf32, #tpu.memory_space<vmem>>, vector<2x4x128xf32>,
      %cst_88 = arith.constant 0.000000e+00 : f32
      %109 = vector.broadcast %cst_88 : f32 to vector<2x4x128xf32>
      %c0_89 = arith.constant 0 : index
      %c0_90 = arith.constant 0 : index
      %c0_91 = arith.constant 0 : index
      %110 = vector.load %arg9[%c0_89, %c0_90, %c0_91] : memref<2x4x128xf32, #tpu.memory_space<vmem>>, vector<2x4x128xf32>
      tpu.vector_store %arg9[%c0_89, %c0_90, %c0_91], %109 {strides = array<i32>} : memref<2x4x128xf32, #tpu.memory_space<vmem>>, vector<2x4x128xf32>,
      %cst_92 = arith.constant 0.000000e+00 : f32
      %111 = vector.broadcast %cst_92 : f32 to vector<2x128xf32>
      %c0_93 = arith.constant 0 : index
      %c0_94 = arith.constant 0 : index
      %112 = vector.load %arg10[%c0_93, %c0_94] : memref<2x128xf32, #tpu.memory_space<vmem>>, vector<2x128xf32>
      tpu.vector_store %arg10[%c0_93, %c0_94], %111 {strides = array<i32>} : memref<2x128xf32, #tpu.memory_space<vmem>>, vector<2x128xf32>,
    } else {
    }
    %c0 = arith.constant 0 : index
    %c0_1 = arith.constant 0 : index
    %c0_2 = arith.constant 0 : index
    %c0_3 = arith.constant 0 : index
    %3 = vector.load %arg2[%c0, %c0_1, %c0_2, %c0_3] : memref<2x4x2x128xf32, #tpu.memory_space<vmem>>, vector<2x4x2x128xf32>
    %c0_4 = arith.constant 0 : index
    %c0_5 = arith.constant 0 : index
    %c0_6 = arith.constant 0 : index
    %c0_7 = arith.constant 0 : index
    %4 = vector.load %arg3[%c0_4, %c0_5, %c0_6, %c0_7] : memref<2x4x2x128xf32, #tpu.memory_space<vmem>>, vector<2x4x2x128xf32>
    %5 = arith.mulf %3, %3 : vector<2x4x2x128xf32>
    %6 = arith.mulf %4, %4 : vector<2x4x2x128xf32>
    %7 = arith.mulf %3, %4 : vector<2x4x2x128xf32>
    %c0_8 = arith.constant 0 : index
    %c0_9 = arith.constant 0 : index
    %c0_10 = arith.constant 0 : index
    %8 = vector.load %arg5[%c0_8, %c0_9, %c0_10] : memref<2x4x128xf32, #tpu.memory_space<vmem>>, vector<2x4x128xf32>
    %cst = arith.constant dense<0.000000e+00> : vector<2x4x128xf32>
    %9 = vector.multi_reduction <add>, %3, %cst [2] : vector<2x4x2x128xf32> to vector<2x4x128xf32>
    %10 = arith.addf %8, %9 : vector<2x4x128xf32>
    %c0_11 = arith.constant 0 : index
    %c0_12 = arith.constant 0 : index
    %c0_13 = arith.constant 0 : index
    %11 = vector.load %arg5[%c0_11, %c0_12, %c0_13] : memref<2x4x128xf32, #tpu.memory_space<vmem>>, vector<2x4x128xf32>
    tpu.vector_store %arg5[%c0_11, %c0_12, %c0_13], %10 {strides = array<i32>} : memref<2x4x128xf32, #tpu.memory_space<vmem>>, vector<2x4x128xf32>,
    %c0_14 = arith.constant 0 : index
    %c0_15 = arith.constant 0 : index
    %c0_16 = arith.constant 0 : index
    %12 = vector.load %arg6[%c0_14, %c0_15, %c0_16] : memref<2x4x128xf32, #tpu.memory_space<vmem>>, vector<2x4x128xf32>
    %cst_17 = arith.constant dense<0.000000e+00> : vector<2x4x128xf32>
    %13 = vector.multi_reduction <add>, %4, %cst_17 [2] : vector<2x4x2x128xf32> to vector<2x4x128xf32>
    %14 = arith.addf %12, %13 : vector<2x4x128xf32>
    %c0_18 = arith.constant 0 : index
    %c0_19 = arith.constant 0 : index
    %c0_20 = arith.constant 0 : index
    %15 = vector.load %arg6[%c0_18, %c0_19, %c0_20] : memref<2x4x128xf32, #tpu.memory_space<vmem>>, vector<2x4x128xf32>
    tpu.vector_store %arg6[%c0_18, %c0_19, %c0_20], %14 {strides = array<i32>} : memref<2x4x128xf32, #tpu.memory_space<vmem>>, vector<2x4x128xf32>,
    %c0_21 = arith.constant 0 : index
    %c0_22 = arith.constant 0 : index
    %c0_23 = arith.constant 0 : index
    %16 = vector.load %arg7[%c0_21, %c0_22, %c0_23] : memref<2x4x128xf32, #tpu.memory_space<vmem>>, vector<2x4x128xf32>
    %cst_24 = arith.constant dense<0.000000e+00> : vector<2x4x128xf32>
    %17 = vector.multi_reduction <add>, %5, %cst_24 [2] : vector<2x4x2x128xf32> to vector<2x4x128xf32>
    %18 = arith.addf %16, %17 : vector<2x4x128xf32>
    %c0_25 = arith.constant 0 : index
    %c0_26 = arith.constant 0 : index
    %c0_27 = arith.constant 0 : index
    %19 = vector.load %arg7[%c0_25, %c0_26, %c0_27] : memref<2x4x128xf32, #tpu.memory_space<vmem>>, vector<2x4x128xf32>
    tpu.vector_store %arg7[%c0_25, %c0_26, %c0_27], %18 {strides = array<i32>} : memref<2x4x128xf32, #tpu.memory_space<vmem>>, vector<2x4x128xf32>,
    %c0_28 = arith.constant 0 : index
    %c0_29 = arith.constant 0 : index
    %c0_30 = arith.constant 0 : index
    %20 = vector.load %arg8[%c0_28, %c0_29, %c0_30] : memref<2x4x128xf32, #tpu.memory_space<vmem>>, vector<2x4x128xf32>
    %cst_31 = arith.constant dense<0.000000e+00> : vector<2x4x128xf32>
    %21 = vector.multi_reduction <add>, %6, %cst_31 [2] : vector<2x4x2x128xf32> to vector<2x4x128xf32>
    %22 = arith.addf %20, %21 : vector<2x4x128xf32>
    %c0_32 = arith.constant 0 : index
    %c0_33 = arith.constant 0 : index
    %c0_34 = arith.constant 0 : index
    %23 = vector.load %arg8[%c0_32, %c0_33, %c0_34] : memref<2x4x128xf32, #tpu.memory_space<vmem>>, vector<2x4x128xf32>
    tpu.vector_store %arg8[%c0_32, %c0_33, %c0_34], %22 {strides = array<i32>} : memref<2x4x128xf32, #tpu.memory_space<vmem>>, vector<2x4x128xf32>,
    %c0_35 = arith.constant 0 : index
    %c0_36 = arith.constant 0 : index
    %c0_37 = arith.constant 0 : index
    %24 = vector.load %arg9[%c0_35, %c0_36, %c0_37] : memref<2x4x128xf32, #tpu.memory_space<vmem>>, vector<2x4x128xf32>
    %cst_38 = arith.constant dense<0.000000e+00> : vector<2x4x128xf32>
    %25 = vector.multi_reduction <add>, %7, %cst_38 [2] : vector<2x4x2x128xf32> to vector<2x4x128xf32>
    %26 = arith.addf %24, %25 : vector<2x4x128xf32>
    %c0_39 = arith.constant 0 : index
    %c0_40 = arith.constant 0 : index
    %c0_41 = arith.constant 0 : index
    %27 = vector.load %arg9[%c0_39, %c0_40, %c0_41] : memref<2x4x128xf32, #tpu.memory_space<vmem>>, vector<2x4x128xf32>
    tpu.vector_store %arg9[%c0_39, %c0_40, %c0_41], %26 {strides = array<i32>} : memref<2x4x128xf32, #tpu.memory_space<vmem>>, vector<2x4x128xf32>,
    %cst_42 = arith.constant dense<0.000000e+00> : vector<2x2x128xf32>
    %28 = vector.multi_reduction <add>, %3, %cst_42 [1] : vector<2x4x2x128xf32> to vector<2x2x128xf32>
    %cst_43 = arith.constant dense<0.000000e+00> : vector<2x2x128xf32>
    %29 = vector.multi_reduction <add>, %4, %cst_43 [1] : vector<2x4x2x128xf32> to vector<2x2x128xf32>
    %cst_44 = arith.constant dense<0.000000e+00> : vector<2x2x128xf32>
    %30 = vector.multi_reduction <add>, %5, %cst_44 [1] : vector<2x4x2x128xf32> to vector<2x2x128xf32>
    %cst_45 = arith.constant dense<0.000000e+00> : vector<2x2x128xf32>
    %31 = vector.multi_reduction <add>, %6, %cst_45 [1] : vector<2x4x2x128xf32> to vector<2x2x128xf32>
    %cst_46 = arith.constant dense<0.000000e+00> : vector<2x2x128xf32>
    %32 = vector.multi_reduction <add>, %7, %cst_46 [1] : vector<2x4x2x128xf32> to vector<2x2x128xf32>
    %cst_47 = arith.constant 2.500000e-01 : f32
    %33 = vector.broadcast %cst_47 : f32 to vector<2x2x128xf32>
    %34 = arith.mulf %28, %33 : vector<2x2x128xf32>
    %cst_48 = arith.constant 2.500000e-01 : f32
    %35 = vector.broadcast %cst_48 : f32 to vector<2x2x128xf32>
    %36 = arith.mulf %29, %35 : vector<2x2x128xf32>
    %37 = arith.mulf %28, %34 : vector<2x2x128xf32>
    %38 = arith.subf %30, %37 : vector<2x2x128xf32>
    %cst_49 = arith.constant 0.000000e+00 : f32
    %39 = vector.broadcast %cst_49 : f32 to vector<2x2x128xf32>
    %40 = arith.maximumf %38, %39 : vector<2x2x128xf32>
    %cst_50 = arith.constant 0.333333343 : f32
    %41 = vector.broadcast %cst_50 : f32 to vector<2x2x128xf32>
    %42 = arith.mulf %40, %41 : vector<2x2x128xf32>
    %43 = arith.mulf %29, %36 : vector<2x2x128xf32>
    %44 = arith.subf %31, %43 : vector<2x2x128xf32>
    %cst_51 = arith.constant 0.000000e+00 : f32
    %45 = vector.broadcast %cst_51 : f32 to vector<2x2x128xf32>
    %46 = arith.maximumf %44, %45 : vector<2x2x128xf32>
    %cst_52 = arith.constant 0.333333343 : f32
    %47 = vector.broadcast %cst_52 : f32 to vector<2x2x128xf32>
    %48 = arith.mulf %46, %47 : vector<2x2x128xf32>
    %49 = arith.mulf %28, %36 : vector<2x2x128xf32>
    %50 = arith.subf %32, %49 : vector<2x2x128xf32>
    %cst_53 = arith.constant 0.333333343 : f32
    %51 = vector.broadcast %cst_53 : f32 to vector<2x2x128xf32>
    %52 = arith.mulf %50, %51 : vector<2x2x128xf32>
    %53 = arith.minimumf %34, %36 : vector<2x2x128xf32>
    %cst_54 = arith.constant 1.000000e-01 : f32
    %54 = vector.broadcast %cst_54 : f32 to vector<2x2x128xf32>
    %55 = arith.subf %53, %54 : vector<2x2x128xf32>
    %56 = arith.subf %34, %55 : vector<2x2x128xf32>
    %57 = arith.subf %36, %55 : vector<2x2x128xf32>
    %58 = arith.mulf %42, %48 : vector<2x2x128xf32>
    %59 = math.sqrt %58 : vector<2x2x128xf32>
    %cst_55 = arith.constant 0.000000e+00 : f32
    %60 = vector.broadcast %cst_55 : f32 to vector<2x2x128xf32>
    %61 = arith.cmpf oeq, %42, %60 : vector<2x2x128xf32>
    %cst_56 = arith.constant 0.000000e+00 : f32
    %62 = vector.broadcast %cst_56 : f32 to vector<2x2x128xf32>
    %63 = arith.cmpf oeq, %48, %62 : vector<2x2x128xf32>
    %64 = arith.andi %61, %63 : vector<2x2x128xi1>
    %65 = arith.extui %64 : vector<2x2x128xi1> to vector<2x2x128xi32>
    %66 = arith.sitofp %65 : vector<2x2x128xi32> to vector<2x2x128xf32>
    %cst_57 = arith.constant 2.000000e+00 : f32
    %67 = vector.broadcast %cst_57 : f32 to vector<2x2x128xf32>
    %68 = arith.mulf %67, %56 : vector<2x2x128xf32>
    %69 = arith.mulf %68, %57 : vector<2x2x128xf32>
    %cst_58 = arith.constant 9.99999974E-6 : f32
    %70 = vector.broadcast %cst_58 : f32 to vector<2x2x128xf32>
    %71 = arith.addf %69, %70 : vector<2x2x128xf32>
    %cst_59 = arith.constant 2.000000e+00 : f32
    %72 = vector.broadcast %cst_59 : f32 to vector<2x2x128xf32>
    %73 = arith.mulf %72, %59 : vector<2x2x128xf32>
    %cst_60 = arith.constant 9.99999974E-6 : f32
    %74 = vector.broadcast %cst_60 : f32 to vector<2x2x128xf32>
    %75 = arith.addf %73, %74 : vector<2x2x128xf32>
    %76 = arith.mulf %71, %75 : vector<2x2x128xf32>
    %cst_61 = arith.constant 5.000000e-06 : f32
    %77 = vector.broadcast %cst_61 : f32 to vector<2x2x128xf32>
    %78 = arith.mulf %77, %66 : vector<2x2x128xf32>
    %79 = arith.addf %52, %78 : vector<2x2x128xf32>
    %80 = arith.mulf %76, %79 : vector<2x2x128xf32>
    %81 = arith.mulf %56, %56 : vector<2x2x128xf32>
    %82 = arith.mulf %57, %57 : vector<2x2x128xf32>
    %83 = arith.addf %81, %82 : vector<2x2x128xf32>
    %cst_62 = arith.constant 9.99999974E-6 : f32
    %84 = vector.broadcast %cst_62 : f32 to vector<2x2x128xf32>
    %85 = arith.addf %83, %84 : vector<2x2x128xf32>
    %86 = arith.addf %42, %48 : vector<2x2x128xf32>
    %cst_63 = arith.constant 9.99999974E-6 : f32
    %87 = vector.broadcast %cst_63 : f32 to vector<2x2x128xf32>
    %88 = arith.addf %86, %87 : vector<2x2x128xf32>
    %89 = arith.mulf %85, %88 : vector<2x2x128xf32>
    %cst_64 = arith.constant 5.000000e-06 : f32
    %90 = vector.broadcast %cst_64 : f32 to vector<2x2x128xf32>
    %91 = arith.addf %59, %90 : vector<2x2x128xf32>
    %92 = arith.mulf %89, %91 : vector<2x2x128xf32>
    %93 = arith.divf %80, %92 : vector<2x2x128xf32>
    %c0_65 = arith.constant 0 : index
    %c0_66 = arith.constant 0 : index
    %94 = vector.load %arg10[%c0_65, %c0_66] : memref<2x128xf32, #tpu.memory_space<vmem>>, vector<2x128xf32>
    %cst_67 = arith.constant dense<0.000000e+00> : vector<2x128xf32>
    %95 = vector.multi_reduction <add>, %93, %cst_67 [1] : vector<2x2x128xf32> to vector<2x128xf32>
    %96 = arith.addf %94, %95 : vector<2x128xf32>
    %c0_68 = arith.constant 0 : index
    %c0_69 = arith.constant 0 : index
    %97 = vector.load %arg10[%c0_68, %c0_69] : memref<2x128xf32, #tpu.memory_space<vmem>>, vector<2x128xf32>
    tpu.vector_store %arg10[%c0_68, %c0_69], %96 {strides = array<i32>} : memref<2x128xf32, #tpu.memory_space<vmem>>, vector<2x128xf32>,
    %c0_i32_70 = arith.constant 0 : i32
    %98 = arith.cmpi eq, %arg1, %c0_i32_70 : i32
    %99 = arith.extui %98 : i1 to i32
    %c0_i32_71 = arith.constant 0 : i32
    %100 = arith.cmpi ne, %99, %c0_i32_71 : i32
    scf.if %100 {
      %c0_72 = arith.constant 0 : index
      %c0_73 = arith.constant 0 : index
      %c0_74 = arith.constant 0 : index
      %101 = vector.load %arg5[%c0_72, %c0_73, %c0_74] : memref<2x4x128xf32, #tpu.memory_space<vmem>>, vector<2x4x128xf32>
      %cst_75 = arith.constant dense<0.000000e+00> : vector<2x4xf32>
      %102 = vector.multi_reduction <add>, %101, %cst_75 [2] : vector<2x4x128xf32> to vector<2x4xf32>
      %c0_76 = arith.constant 0 : index
      %c0_77 = arith.constant 0 : index
      %c0_78 = arith.constant 0 : index
      %103 = vector.load %arg6[%c0_76, %c0_77, %c0_78] : memref<2x4x128xf32, #tpu.memory_space<vmem>>, vector<2x4x128xf32>
      %cst_79 = arith.constant dense<0.000000e+00> : vector<2x4xf32>
      %104 = vector.multi_reduction <add>, %103, %cst_79 [2] : vector<2x4x128xf32> to vector<2x4xf32>
      %c0_80 = arith.constant 0 : index
      %c0_81 = arith.constant 0 : index
      %c0_82 = arith.constant 0 : index
      %105 = vector.load %arg7[%c0_80, %c0_81, %c0_82] : memref<2x4x128xf32, #tpu.memory_space<vmem>>, vector<2x4x128xf32>
      %cst_83 = arith.constant dense<0.000000e+00> : vector<2x4xf32>
      %106 = vector.multi_reduction <add>, %105, %cst_83 [2] : vector<2x4x128xf32> to vector<2x4xf32>
      %c0_84 = arith.constant 0 : index
      %c0_85 = arith.constant 0 : index
      %c0_86 = arith.constant 0 : index
      %107 = vector.load %arg8[%c0_84, %c0_85, %c0_86] : memref<2x4x128xf32, #tpu.memory_space<vmem>>, vector<2x4x128xf32>
      %cst_87 = arith.constant dense<0.000000e+00> : vector<2x4xf32>
      %108 = vector.multi_reduction <add>, %107, %cst_87 [2] : vector<2x4x128xf32> to vector<2x4xf32>
      %c0_88 = arith.constant 0 : index
      %c0_89 = arith.constant 0 : index
      %c0_90 = arith.constant 0 : index
      %109 = vector.load %arg9[%c0_88, %c0_89, %c0_90] : memref<2x4x128xf32, #tpu.memory_space<vmem>>, vector<2x4x128xf32>
      %cst_91 = arith.constant dense<0.000000e+00> : vector<2x4xf32>
      %110 = vector.multi_reduction <add>, %109, %cst_91 [2] : vector<2x4x128xf32> to vector<2x4xf32>
      %cst_92 = arith.constant 3.906250e-03 : f32
      %111 = vector.broadcast %cst_92 : f32 to vector<2x4xf32>
      %112 = arith.mulf %102, %111 : vector<2x4xf32>
      %cst_93 = arith.constant 3.906250e-03 : f32
      %113 = vector.broadcast %cst_93 : f32 to vector<2x4xf32>
      %114 = arith.mulf %104, %113 : vector<2x4xf32>
      %115 = arith.mulf %102, %112 : vector<2x4xf32>
      %116 = arith.subf %106, %115 : vector<2x4xf32>
      %cst_94 = arith.constant 0.000000e+00 : f32
      %117 = vector.broadcast %cst_94 : f32 to vector<2x4xf32>
      %118 = arith.maximumf %116, %117 : vector<2x4xf32>
      %cst_95 = arith.constant 0.00392156886 : f32
      %119 = vector.broadcast %cst_95 : f32 to vector<2x4xf32>
      %120 = arith.mulf %118, %119 : vector<2x4xf32>
      %121 = arith.mulf %104, %114 : vector<2x4xf32>
      %122 = arith.subf %108, %121 : vector<2x4xf32>
      %cst_96 = arith.constant 0.000000e+00 : f32
      %123 = vector.broadcast %cst_96 : f32 to vector<2x4xf32>
      %124 = arith.maximumf %122, %123 : vector<2x4xf32>
      %cst_97 = arith.constant 0.00392156886 : f32
      %125 = vector.broadcast %cst_97 : f32 to vector<2x4xf32>
      %126 = arith.mulf %124, %125 : vector<2x4xf32>
      %127 = arith.mulf %102, %114 : vector<2x4xf32>
      %128 = arith.subf %110, %127 : vector<2x4xf32>
      %cst_98 = arith.constant 0.00392156886 : f32
      %129 = vector.broadcast %cst_98 : f32 to vector<2x4xf32>
      %130 = arith.mulf %128, %129 : vector<2x4xf32>
      %131 = math.sqrt %120 : vector<2x4xf32>
      %132 = math.sqrt %126 : vector<2x4xf32>
      %133 = arith.minimumf %112, %114 : vector<2x4xf32>
      %cst_99 = arith.constant 1.000000e-01 : f32
      %134 = vector.broadcast %cst_99 : f32 to vector<2x4xf32>
      %135 = arith.subf %133, %134 : vector<2x4xf32>
      %136 = arith.subf %112, %135 : vector<2x4xf32>
      %137 = arith.subf %114, %135 : vector<2x4xf32>
      %cst_100 = arith.constant 2.000000e+00 : f32
      %138 = vector.broadcast %cst_100 : f32 to vector<2x4xf32>
      %139 = arith.mulf %138, %136 : vector<2x4xf32>
      %140 = arith.mulf %139, %137 : vector<2x4xf32>
      %cst_101 = arith.constant 9.99999974E-6 : f32
      %141 = vector.broadcast %cst_101 : f32 to vector<2x4xf32>
      %142 = arith.addf %140, %141 : vector<2x4xf32>
      %143 = arith.mulf %136, %136 : vector<2x4xf32>
      %144 = arith.mulf %137, %137 : vector<2x4xf32>
      %145 = arith.addf %143, %144 : vector<2x4xf32>
      %cst_102 = arith.constant 9.99999974E-6 : f32
      %146 = vector.broadcast %cst_102 : f32 to vector<2x4xf32>
      %147 = arith.addf %145, %146 : vector<2x4xf32>
      %148 = arith.divf %142, %147 : vector<2x4xf32>
      %cst_103 = arith.constant 2.000000e+00 : f32
      %149 = vector.broadcast %cst_103 : f32 to vector<2x4xf32>
      %150 = arith.mulf %149, %131 : vector<2x4xf32>
      %151 = arith.mulf %150, %132 : vector<2x4xf32>
      %cst_104 = arith.constant 9.99999974E-6 : f32
      %152 = vector.broadcast %cst_104 : f32 to vector<2x4xf32>
      %153 = arith.addf %151, %152 : vector<2x4xf32>
      %154 = arith.addf %120, %126 : vector<2x4xf32>
      %cst_105 = arith.constant 9.99999974E-6 : f32
      %155 = vector.broadcast %cst_105 : f32 to vector<2x4xf32>
      %156 = arith.addf %154, %155 : vector<2x4xf32>
      %157 = arith.divf %153, %156 : vector<2x4xf32>
      %cst_106 = arith.constant 0.000000e+00 : f32
      %158 = vector.broadcast %cst_106 : f32 to vector<2x4xf32>
      %159 = arith.cmpf ole, %131, %158 : vector<2x4xf32>
      %cst_107 = arith.constant 0.000000e+00 : f32
      %160 = vector.broadcast %cst_107 : f32 to vector<2x4xf32>
      %161 = arith.cmpf ole, %132, %160 : vector<2x4xf32>
      %162 = arith.andi %159, %161 : vector<2x4xi1>
      %163 = arith.extui %162 : vector<2x4xi1> to vector<2x4xi32>
      %164 = arith.sitofp %163 : vector<2x4xi32> to vector<2x4xf32>
      %cst_108 = arith.constant 5.000000e-06 : f32
      %165 = vector.broadcast %cst_108 : f32 to vector<2x4xf32>
      %166 = arith.mulf %165, %164 : vector<2x4xf32>
      %167 = arith.addf %130, %166 : vector<2x4xf32>
      %168 = arith.mulf %131, %132 : vector<2x4xf32>
      %cst_109 = arith.constant 5.000000e-06 : f32
      %169 = vector.broadcast %cst_109 : f32 to vector<2x4xf32>
      %170 = arith.addf %168, %169 : vector<2x4xf32>
      %171 = arith.divf %167, %170 : vector<2x4xf32>
      %172 = arith.mulf %148, %157 : vector<2x4xf32>
      %173 = arith.mulf %172, %171 : vector<2x4xf32>
      %c0_110 = arith.constant 0 : index
      %c0_111 = arith.constant 0 : index
      %174 = vector.load %arg10[%c0_110, %c0_111] : memref<2x128xf32, #tpu.memory_space<vmem>>, vector<2x128xf32>
      %cst_112 = arith.constant dense<0.000000e+00> : vector<2xf32>
      %175 = vector.multi_reduction <add>, %174, %cst_112 [1] : vector<2x128xf32> to vector<2xf32>
      %cst_113 = arith.constant 0.000000e+00 : f32
      %176 = vector.broadcast %cst_113 : f32 to vector<2xf32>
      %177 = arith.subf %175, %176 : vector<2xf32>
      %cst_114 = arith.constant 3.906250e-03 : f32
      %178 = vector.broadcast %cst_114 : f32 to vector<2xf32>
      %179 = arith.mulf %177, %178 : vector<2xf32>
      %180 = vector.shape_cast %179 : vector<2xf32> to vector<2x1xf32>
      %181 = vector.broadcast %180 : vector<2x1xf32> to vector<2x4xf32>
      %182 = arith.addf %173, %181 : vector<2x4xf32>
      %cst_115 = arith.constant 5.000000e-01 : f32
      %183 = vector.broadcast %cst_115 : f32 to vector<2x4xf32>
      %184 = arith.mulf %183, %182 : vector<2x4xf32>
      %185 = vector.shape_cast %184 : vector<2x4xf32> to vector<2x1x4xf32>
      %c0_116 = arith.constant 0 : index
      %c0_117 = arith.constant 0 : index
      %c0_118 = arith.constant 0 : index
      %186 = vector.load %arg4[%c0_116, %c0_117, %c0_118] : memref<2x1x4xf32, #tpu.memory_space<vmem>>, vector<2x1x4xf32>
      tpu.vector_store %arg4[%c0_116, %c0_117, %c0_118], %185 {strides = array<i32>} : memref<2x1x4xf32, #tpu.memory_space<vmem>>, vector<2x1x4xf32>,
    } else {
    }
    return
  }
  func.func @transform_0(%arg0: i32, %arg1: i32) -> (i32, i32, i32, i32) {
    %c0_i32 = arith.constant 0 : i32
    %c0_i32_0 = arith.constant 0 : i32
    %c0_i32_1 = arith.constant 0 : i32
    return %arg0, %c0_i32, %arg1, %c0_i32_0 : i32, i32, i32, i32
  }
  func.func @transform_1(%arg0: i32, %arg1: i32) -> (i32, i32, i32, i32) {
    %c0_i32 = arith.constant 0 : i32
    %c0_i32_0 = arith.constant 0 : i32
    %c0_i32_1 = arith.constant 0 : i32
    return %arg0, %c0_i32, %arg1, %c0_i32_0 : i32, i32, i32, i32
  }
  func.func @transform_2(%arg0: i32, %arg1: i32) -> (i32, i32, i32) {
    %c0_i32 = arith.constant 0 : i32
    %c0_i32_0 = arith.constant 0 : i32
    %c0_i32_1 = arith.constant 0 : i32
    return %arg0, %c0_i32, %c0_i32_0 : i32, i32, i32
  }
}

</mosaic_0001>

<bundles_post_ra>
// kernel: tpu_custom_call.1
= control target key start
LH: loop header
LB: loop body
LE: loop exit
PB: predicated region body
PF: predicated region fallthrough
CT: control target
= control target key end

     0   :  { %7 = vsyncpa [#allocation9], 0  ;;  %s1432_s0 = inlined_call_operand.hbm [shape: f32[2,4,2,128], index: 0, kind: input, shape index: {}]   ;;  %s1433_s1 = inlined_call_operand.hbm [shape: f32[2,4,2,128], index: 1, kind: input, shape index: {}]   ;;  %s1434_s2 = inlined_call_operand.hbm [shape: f32[2,1,4], index: 2, kind: output, shape index: {}]  }
   0x1   :  { %8 = vsyncpa [#allocation12], 0 }
   0x2   :  { %9 = vsyncpa [#allocation10], 0  ;;  %s984_s9 = smov [#allocation8]   ;;  %s912_s13 = scalar_lea.hbm %s1432_s0, 256 }
   0x3   :  { %s15_s10 = sshll.u32 %s984_s9, 4  ;;  %p913_p0 = scmp.ne.s32.totalorder %s1432_s0, %s912_s13  ;;  %s16_s10 = int_to_ptr.vmem [resolvable:$true] %s15_s10 }
   0x4   :  { %p916_p1 = scmp.lt.u32.totalorder %s912_s13, %s1432_s0 }
   0x6   :  { %p918_p2 = pnand %p916_p1, %p913_p0 }
   0x8   :  { %921 = shalt.err (!%p918_p2)
}
   0x9   :  { %s922_s18 = scalar_lea.vmem %s16_s10, 256  ;;  %p927_p4 = scmp.lt.s32.totalorder %s16_s10, %s16_s10 }
   0xa   :  { %p923_p3 = scmp.ne.s32.totalorder %s16_s10, %s922_s18  ;;  %p928_p5 = scmp.lt.s32.totalorder %s922_s18, %s922_s18 }
   0xc   :  { %p929_p6 = por %p928_p5, %p927_p4 }
   0xe   :  { %p930_p7 = pnand %p929_p6, %p923_p3 }
  0x10   :  { %933 = shalt.err (!%p930_p7)
}
  0x11   :  { %s985_s19 = smov 32   ;;  %s986_s20 = smov 2  }
  0x12   :  { %21 = dma.hbm_to_vmem [thread:$0]  %s1432_s0, 256, %s16_s10, [#allocation9], %s985_s19, %s985_s19, %s986_s20  }
  0x13   :  { %s987_s23 = smov [#allocation11]   ;;  %s934_s27 = scalar_lea.hbm %s1433_s1, 256 }
  0x14   :  { %s27_s24 = sshll.u32 %s987_s23, 4  ;;  %p935_p8 = scmp.ne.s32.totalorder %s1433_s1, %s934_s27  ;;  %s28_s24 = int_to_ptr.vmem [resolvable:$true] %s27_s24 }
  0x15   :  { %p938_p9 = scmp.lt.u32.totalorder %s934_s27, %s1433_s1 }
  0x17   :  { %p940_p10 = pnand %p938_p9, %p935_p8 }
  0x19   :  { %943 = shalt.err (!%p940_p10)
}
  0x1a   :  { %s944_s4 = scalar_lea.vmem %s28_s24, 256  ;;  %p949_p12 = scmp.lt.s32.totalorder %s28_s24, %s28_s24 }
  0x1b   :  { %p945_p11 = scmp.ne.s32.totalorder %s28_s24, %s944_s4  ;;  %p950_p13 = scmp.lt.s32.totalorder %s944_s4, %s944_s4 }
  0x1d   :  { %p951_p0 = por %p950_p13, %p949_p12 }
  0x1f   :  { %p952_p1 = pnand %p951_p0, %p945_p11 }
  0x21   :  { %955 = shalt.err (!%p952_p1)
}
  0x22   :  { %33 = dma.hbm_to_vmem [thread:$0]  %s1433_s1, 256, %s28_s24, [#allocation12], %s985_s19, %s985_s19, %s986_s20  }
  0x23   :  { %978 = dma.done.wait [#allocation9], 256  }
  0x24   :  { %979 = vsyncadd [#allocation9], 4294967040 }
  0x25   :  { %980 = dma.done.wait [#allocation12], 256  }
  0x26   :  { %981 = vsyncadd [#allocation12], 4294967040  ;;  %v988_v0 = vmov 0.0   ;;  %vm97_vm0 = vcmask 1041408   ;;  %v1043_v1 = vld [vmem:[#allocation11] sm:$0x3] }
  0x27   :  { %46 = vst [vmem:[#allocation3] sm:$0xf] %v988_v0  ;;  %44 = vst [vmem:[#allocation2] sm:$0xf] %v988_v0  ;;  %v1045_v2 = vld [vmem:[#allocation11 + $0x2] sm:$0x3] }
  0x28   :  { %45 = vst [vmem:[#allocation2 + $0x4] sm:$0xf] %v988_v0  ;;  %47 = vst [vmem:[#allocation3 + $0x4] sm:$0xf] %v988_v0  ;;  %v1047_v3 = vld [vmem:[#allocation11 + $0x4] sm:$0x3] }
  0x29   :  { %48 = vst [vmem:[#allocation4] sm:$0xf] %v988_v0  ;;  %49 = vst [vmem:[#allocation4 + $0x4] sm:$0xf] %v988_v0  ;;  %v1049_v4 = vld [vmem:[#allocation11 + $0x6] sm:$0x3] }
  0x2a   :  { %50 = vst [vmem:[#allocation5] sm:$0xf] %v988_v0  ;;  %51 = vst [vmem:[#allocation5 + $0x4] sm:$0xf] %v988_v0  ;;  %v179_v5 = vsel %vm97_vm0, %v1043_v1, 0.0  ;;  %v186_v6 = vsel %vm97_vm0, %v1045_v2, 0.0 }
  0x2b   :  { %52 = vst [vmem:[#allocation6] sm:$0xf] %v988_v0  ;;  %53 = vst [vmem:[#allocation6 + $0x4] sm:$0xf] %v988_v0  ;;  %v180_v7 = vrot.slane %v179_v5, 4  ;;  %v187_v8 = vrot.slane %v186_v6, 4  ;;  %v495_v14 = vadd.f32 %v186_v6, %v179_v5 }
  0x2c   :  { %54 = vst [vmem:[#allocation7] sm:$0x3] %v988_v0  ;;  %v193_v9 = vsel %vm97_vm0, %v1047_v3, 0.0  ;;  %v200_v10 = vsel %vm97_vm0, %v1049_v4, 0.0  ;;  %v1059_v11 = vld [vmem:[#allocation8] sm:$0x3] }
  0x2d   :  { %vm162_vm1 = vcmask 1041409   ;;  %v194_v12 = vrot.slane %v193_v9, 4  ;;  %v201_v13 = vrot.slane %v200_v10, 4  ;;  %v1061_v15 = vld [vmem:[#allocation8 + $0x2] sm:$0x3]  ;;  %v181_v17 = vadd.f32 %v180_v7, %v179_v5  ;;  %s990_s1 = smov [#allocation13]  }
  0x2e   :  { %v1063_v16 = vld [vmem:[#allocation8 + $0x4] sm:$0x3]  ;;  %v188_v18 = vadd.f32 %v187_v8, %v186_v6  ;;  %v98_v19 = vsel %vm97_vm0, %v1059_v11, 0.0  ;;  %v105_v20 = vsel %vm97_vm0, %v1061_v15, 0.0  ;;  %v496_v23 = vadd.f32 %v495_v14, %v193_v9  ;;  %v1073_v42 = vld [vmem:[#allocation8 + $0x6] sm:$0x3] }
  0x2f   :  { %v195_v21 = vadd.f32 %v194_v12, %v193_v9  ;;  %v202_v22 = vadd.f32 %v201_v13, %v200_v10  ;;  %v99_v24 = vrot.slane %v98_v19, 4  ;;  %v182_v25 = vrot.slane %v181_v17, 2  ;;  %v1075_v52 = vld [vmem:[#allocation11 + $0x8] sm:$0x3]  ;;  %v177_v57 = vld [vmem:[#allocation3] sm:$0xf] }
  0x30   :  { %v189_v26 = vrot.slane %v188_v18, 2  ;;  %v106_v27 = vrot.slane %v105_v20, 4  ;;  %v112_v28 = vsel %vm97_vm0, %v1063_v16, 0.0  ;;  %v1071_v31 = vadd.f32 %v496_v23, %v200_v10  ;;  %v1080_v62 = vld [vmem:[#allocation11 + $0xa] sm:$0x3]  ;;  %s852_s6 = sshll.u32 %s990_s1, 4  ;;  %s853_s6 = int_to_ptr.vmem [resolvable:$true] %s852_s6 }
  0x31   :  { %v196_v29 = vrot.slane %v195_v21, 2  ;;  %v203_v30 = vrot.slane %v202_v22, 2  ;;  %v100_v32 = vadd.f32 %v99_v24, %v98_v19  ;;  %v183_v33 = vadd.f32 %v182_v25, %v181_v17  ;;  %v1086_v13 = vld [vmem:[#allocation11 + $0xc] sm:$0x3]  ;;  %s956_s7 = scalar_lea.vmem %s853_s6, 32  ;;  %p961_p3 = scmp.lt.s32.totalorder %s853_s6, %s853_s6 }
  0x32   :  { %v190_v34 = vadd.f32 %v189_v26, %v188_v18  ;;  %v107_v35 = vadd.f32 %v106_v27, %v105_v20  ;;  %v113_v36 = vrot.slane %v112_v28, 4  ;;  %vm164_vm2 = vcmask 1042434   ;;  %v1088_v18 = vld [vmem:[#allocation11 + $0xe] sm:$0x3]  ;;  %p957_p2 = scmp.ne.s32.totalorder %s853_s6, %s956_s7  ;;  %p962_p4 = scmp.lt.s32.totalorder %s956_s7, %s956_s7 }
  0x33   :  { %v197_v37 = vadd.f32 %v196_v29, %v195_v21  ;;  %v204_v38 = vadd.f32 %v203_v30, %v202_v22  ;;  %v101_v39 = vrot.slane %v100_v32, 2  ;;  %v184_v40 = vrot.slane %v183_v33, 1 }
  0x34   :  { %v191_v41 = vrot.slane %v190_v34, 1  ;;  %v108_v43 = vrot.slane %v107_v35, 2  ;;  %v114_v44 = vadd.f32 %v113_v36, %v112_v28  ;;  %vm166_vm3 = vcmask 1043459   ;;  %p963_p5 = por %p962_p4, %p961_p3 }
  0x35   :  { %v198_v45 = vrot.slane %v197_v37, 1  ;;  %v205_v46 = vrot.slane %v204_v38, 1  ;;  %v102_v47 = vadd.f32 %v101_v39, %v100_v32  ;;  %v185_v48 = vadd.f32 %v184_v40, %v183_v33 }
  0x36   :  { %v192_v49 = vadd.f32 %v191_v41, %v190_v34  ;;  %v109_v50 = vadd.f32 %v108_v43, %v107_v35  ;;  %v115_v51 = vrot.slane %v114_v44, 2  ;;  %v119_v56 = vsel %vm97_vm0, %v1073_v42, 0.0  ;;  %p964_p6 = pnand %p963_p5, %p957_p2 }
  0x37   :  { %v199_v53 = vadd.f32 %v198_v45, %v197_v37  ;;  %v206_v54 = vadd.f32 %v205_v46, %v204_v38  ;;  %v103_v55 = vrot.slane %v102_v47, 1  ;;  %v120_v61 = vrot.slane %v119_v56, 4 }
  0x38   :  { %v243_v58 = vsel %vm162_vm1, %v192_v49, %v185_v48  ;;  %v110_v59 = vrot.slane %v109_v50, 1  ;;  %v116_v60 = vadd.f32 %v115_v51, %v114_v44  ;;  %v489_v6 = vadd.f32 %v105_v20, %v98_v19 }
  0x39   :  { %v244_v63 = vsel %vm164_vm2, %v199_v53, %v243_v58  ;;  %v104_v5 = vadd.f32 %v103_v55, %v102_v47  ;;  %v207_v7 = vsel %vm97_vm0, %v1075_v52, 0.0  ;;  %vm645_vm4 = vcmask 1043456   ;;  %v95_v47 = vld [vmem:[#allocation2] sm:$0xf] }
  0x3a   :  { %v245_v8 = vsel %vm166_vm3, %v206_v54, %v244_v63  ;;  %v111_v9 = vadd.f32 %v110_v59, %v109_v50  ;;  %v117_v10 = vrot.slane %v116_v60, 1  ;;  %v121_v12 = vadd.f32 %v120_v61, %v119_v56  ;;  %v1119_v63 = vld [vmem:[#allocation8 + $0xa] sm:$0x3] }
  0x3b   :  { %v251_v14 = vadd.f32 %v245_v8, %v177_v57  ;;  %v490_v17 = vadd.f32 %v489_v6, %v112_v28  ;;  %v208_v21 = vrot.slane %v207_v7, 4  ;;  %v214_v22 = vsel %vm97_vm0, %v1080_v62, 0.0 }
  0x3c   :  { %v1093_v19 = vmul.f32 0.25, %v1071_v31  ;;  %v118_v20 = vadd.f32 %v117_v10, %v116_v60  ;;  %v122_v23 = vrot.slane %v121_v12, 2  ;;  %v215_v24 = vrot.slane %v214_v22, 4 }
  0x3d   :  { %253 = vst [vmem:[#allocation3] sm:$0xf] %v251_v14  ;;  %v163_v25 = vsel %vm162_vm1, %v111_v9, %v104_v5  ;;  %v1096_v26 = vadd.f32 %v490_v17, %v119_v56  ;;  %v209_v27 = vadd.f32 %v208_v21, %v207_v7  ;;  %v221_v28 = vsel %vm97_vm0, %v1086_v13, 0.0  ;;  %v1114_v56 = vld [vmem:[#allocation8 + $0x8] sm:$0x3] }
  0x3e   :  { %v123_v29 = vadd.f32 %v122_v23, %v121_v12  ;;  %v216_v30 = vadd.f32 %v215_v24, %v214_v22  ;;  %v222_v32 = vrot.slane %v221_v28, 4  ;;  %v228_v33 = vsel %vm97_vm0, %v1088_v18, 0.0  ;;  %v1126_v9 = vld [vmem:[#allocation8 + $0xc] sm:$0x3]  ;;  %v1128_v17 = vld [vmem:[#allocation8 + $0xe] sm:$0x3] }
  0x3f   :  { %v1103_v34 = vmul.f32 0.25, %v1096_v26  ;;  %v1107_v35 = vmul.f32 %v1093_v19, %v1096_v26  ;;  %v210_v36 = vrot.slane %v209_v27, 2  ;;  %v229_v37 = vrot.slane %v228_v33, 4 }
  0x40   :  { %v124_v38 = vrot.slane %v123_v29, 1  ;;  %v217_v39 = vrot.slane %v216_v30, 2  ;;  %v223_v40 = vadd.f32 %v222_v32, %v221_v28  ;;  %v498_v41 = vadd.f32 %v214_v22, %v207_v7 }
  0x41   :  { %v165_v43 = vsel %vm164_vm2, %v118_v20, %v163_v25  ;;  %v545_v44 = vmin.f32 %v1103_v34, %v1093_v19  ;;  %v211_v45 = vadd.f32 %v210_v36, %v209_v27  ;;  %v230_v46 = vadd.f32 %v229_v37, %v228_v33 }
  0x42   :  { %v125_v48 = vadd.f32 %v124_v38, %v123_v29  ;;  %v218_v49 = vadd.f32 %v217_v39, %v216_v30  ;;  %v224_v50 = vrot.slane %v223_v40, 2  ;;  %v499_v51 = vadd.f32 %v498_v41, %v221_v28 }
  0x43   :  { %v1112_v53 = vadd.f32 -0.1, %v545_v44  ;;  %v212_v54 = vrot.slane %v211_v45, 1  ;;  %v231_v55 = vrot.slane %v230_v46, 2  ;;  %v126_v21 = vsel %vm97_vm0, %v1114_v56, 0.0 }
  0x44   :  { %v652_v57 = vld [vmem:[#allocation3] sm:$0xf]  ;;  %v167_v58 = vsel %vm166_vm3, %v125_v48, %v165_v43  ;;  %v219_v59 = vrot.slane %v218_v49, 1  ;;  %v225_v60 = vadd.f32 %v224_v50, %v223_v40  ;;  %v1117_v61 = vadd.f32 %v499_v51, %v228_v33  ;;  %v178_v33 = vld [vmem:[#allocation3 + $0x4] sm:$0xf] }
  0x45   :  { %v654_v5 = vsel %vm645_vm4, %v652_v57, 0.0  ;;  %v173_v6 = vadd.f32 %v167_v58, %v95_v47  ;;  %v1124_v7 = vsub.f32 %v1103_v34, %v1112_v53  ;;  %v213_v8 = vadd.f32 %v212_v54, %v211_v45 }
  0x46   :  { %655 = vadd.xlane.f32.xlu1 %v654_v5  ;;  %v220_v10 = vadd.f32 %v219_v59, %v218_v49  ;;  %v226_v12 = vrot.slane %v225_v60, 1  ;;  %v232_v14 = vadd.f32 %v231_v55, %v230_v46  ;;  %v127_v22 = vrot.slane %v126_v21, 4 }
  0x47   :  { %175 = vst [vmem:[#allocation2] sm:$0xf] %v173_v6  ;;  %v133_v20 = vsel %vm97_vm0, %v1119_v63, 0.0  ;;  %v140_v27 = vsel %vm97_vm0, %v1126_v9, 0.0  ;;  %v147_v32 = vsel %vm97_vm0, %v1128_v17, 0.0  ;;  %v1142_v43 = vmul.f32 %v1043_v1, %v1043_v1 }
  0x48   :  { %v227_v23 = vadd.f32 %v226_v12, %v225_v60  ;;  %v233_v24 = vrot.slane %v232_v14, 1  ;;  %v246_v25 = vsel %vm162_vm1, %v220_v10, %v213_v8  ;;  %v128_v28 = vadd.f32 %v127_v22, %v126_v21 }
  0x49   :  { %v134_v29 = vrot.slane %v133_v20, 4  ;;  %v141_v30 = vrot.slane %v140_v27, 4  ;;  %v148_v38 = vrot.slane %v147_v32, 4  ;;  %v75_v46 = vmul.f32 %v1114_v56, %v1114_v56 }
  0x4a   :  { %v234_v36 = vadd.f32 %v233_v24, %v232_v14  ;;  %v247_v37 = vsel %vm164_vm2, %v227_v23, %v246_v25  ;;  %v129_v39 = vrot.slane %v128_v28, 2  ;;  %v76_v47 = vmul.f32 %v1119_v63, %v1119_v63 }
  0x4b   :  { %v135_v40 = vadd.f32 %v134_v29, %v133_v20  ;;  %v142_v41 = vadd.f32 %v141_v30, %v140_v27  ;;  %v149_v45 = vadd.f32 %v148_v38, %v147_v32  ;;  %v492_v57 = vadd.f32 %v133_v20, %v126_v21 }
  0x4c   :  { %v248_v44 = vsel %vm166_vm3, %v234_v36, %v247_v37  ;;  %v130_v49 = vadd.f32 %v129_v39, %v128_v28  ;;  %v77_v58 = vmul.f32 %v1126_v9, %v1126_v9  ;;  %v1153_v59 = vmul.f32 %v1045_v2, %v1045_v2 }
  0x4d   :  { %v252_v48 = vadd.f32 %v248_v44, %v178_v33  ;;  %v136_v50 = vrot.slane %v135_v40, 2  ;;  %v143_v51 = vrot.slane %v142_v41, 2  ;;  %v150_v55 = vrot.slane %v149_v45, 2 }
  0x4e   :  { %v643_v54 = vld [vmem:[#allocation2] sm:$0xf]  ;;  %v131_v5 = vrot.slane %v130_v49, 1  ;;  %v78_v12 = vmul.f32 %v1128_v17, %v1128_v17  ;;  %v285_v14 = vsel %vm97_vm0, %v75_v46, 0.0  ;;  %v292_v21 = vsel %vm97_vm0, %v76_v47, 0.0 }
  0x4f   :  { %v646_v60 = vsel %vm645_vm4, %v643_v54, 0.0  ;;  %254 = vst [vmem:[#allocation3 + $0x4] sm:$0xf] %v252_v48  ;;  %v137_v6 = vadd.f32 %v136_v50, %v135_v40  ;;  %v144_v8 = vadd.f32 %v143_v51, %v142_v41  ;;  %v151_v10 = vadd.f32 %v150_v55, %v149_v45  ;;  %v96_v45 = vld [vmem:[#allocation2 + $0x4] sm:$0xf] }
  0x50   :  { %647 = vadd.xlane.f32.xlu0 %v646_v60  ;;  %v132_v22 = vadd.f32 %v131_v5, %v130_v49  ;;  %v286_v24 = vrot.slane %v285_v14, 4  ;;  %v493_v28 = vadd.f32 %v492_v57, %v140_v27  ;;  %v293_v29 = vrot.slane %v292_v21, 4 }
  0x51   :  { %v138_v20 = vrot.slane %v137_v6, 1  ;;  %v145_v23 = vrot.slane %v144_v8, 1  ;;  %v152_v25 = vrot.slane %v151_v10, 1  ;;  %v299_v30 = vsel %vm97_vm0, %v77_v58, 0.0 }
  0x52   :  { %v287_v37 = vadd.f32 %v286_v24, %v285_v14  ;;  %v300_v38 = vrot.slane %v299_v30, 4  ;;  %v294_v40 = vadd.f32 %v293_v29, %v292_v21  ;;  %v1162_v41 = vsel %vm97_vm0, %v78_v12, 0.0 }
  0x53   :  { %v139_v33 = vadd.f32 %v138_v20, %v137_v6  ;;  %v146_v36 = vadd.f32 %v145_v23, %v144_v8  ;;  %v153_v39 = vadd.f32 %v152_v25, %v151_v10  ;;  %v71_v44 = vmul.f32 %v1059_v11, %v1059_v11 }
  0x54   :  { %v288_v47 = vrot.slane %v287_v37, 2  ;;  %v301_v27 = vadd.f32 %v300_v38, %v299_v30  ;;  %v307_v48 = vrot.slane %v1162_v41, 4  ;;  %v1170_v49 = vmul.f32 %v1093_v19, %v1071_v31 }
  0x55   :  { %v168_v46 = vsel %vm162_vm1, %v139_v33, %v132_v22  ;;  %v1173_v54 = vadd.f32 %v493_v28, %v147_v32  ;;  %v295_v55 = vrot.slane %v294_v40, 2  ;;  %v1179_v6 = vmul.f32 %v1103_v34, %v1096_v26 }
  0x56   :  { %v653_v50 = vld [vmem:[#allocation3 + $0x4] sm:$0xf]  ;;  %v169_v51 = vsel %vm164_vm2, %v146_v36, %v168_v46  ;;  %v289_v60 = vadd.f32 %v288_v47, %v287_v37  ;;  %v302_v5 = vrot.slane %v301_v27, 2  ;;  %v308_v10 = vadd.f32 %v307_v48, %v1162_v41 }
  0x57   :  { %v657_v57 = vsel %vm645_vm4, %v653_v50, 0.0  ;;  %v170_v58 = vsel %vm166_vm3, %v153_v39, %v169_v51  ;;  %v296_v31 = vadd.f32 %v295_v55, %v294_v40  ;;  %v72_v32 = vmul.f32 %v1061_v15, %v1061_v15 }
  0x58   :  { %658 = vadd.xlane.f32.xlu1 %v657_v57  ;;  %v174_v8 = vadd.f32 %v170_v58, %v96_v45  ;;  %v290_v12 = vrot.slane %v289_v60, 1  ;;  %v303_v22 = vadd.f32 %v302_v5, %v301_v27  ;;  %v73_v20 = vmul.f32 %v1063_v16, %v1063_v16  ;;  %v256_v57 = vld [vmem:[#allocation4 + $0x4] sm:$0xf] }
  0x59   :  { %v1187_v23 = vmul.f32 0.25, %v1173_v54  ;;  %v297_v24 = vrot.slane %v296_v31, 1  ;;  %v309_v26 = vrot.slane %v308_v10, 2  ;;  %v74_v34 = vmul.f32 %v1073_v42, %v1073_v42 }
  0x5a   :  { %176 = vst [vmem:[#allocation2 + $0x4] sm:$0xf] %v174_v8  ;;  %v291_v25 = vadd.f32 %v290_v12, %v289_v60  ;;  %v304_v28 = vrot.slane %v303_v22, 1  ;;  %v504_v29 = vadd.f32 %v292_v21, %v285_v14  ;;  %v257_v33 = vsel %vm97_vm0, %v71_v44, 0.0 }
  0x5b   :  { %v298_v36 = vadd.f32 %v297_v24, %v296_v31  ;;  %v310_v37 = vadd.f32 %v309_v26, %v308_v10  ;;  %v258_v38 = vrot.slane %v257_v33, 4  ;;  %v264_v39 = vsel %vm97_vm0, %v72_v32, 0.0 }
  0x5c   :  { %v1194_v40 = vmul.f32 0.25, %v1117_v61  ;;  %v305_v45 = vadd.f32 %v304_v28, %v303_v22  ;;  %v265_v46 = vrot.slane %v264_v39, 4  ;;  %v271_v47 = vsel %vm97_vm0, %v73_v20, 0.0 }
  0x5d   :  { %v311_v27 = vrot.slane %v310_v37, 1  ;;  %v324_v48 = vsel %vm162_vm1, %v298_v36, %v291_v25  ;;  %v259_v50 = vadd.f32 %v258_v38, %v257_v33  ;;  %v1199_v14 = vsel %vm97_vm0, %v74_v34, 0.0 }
  0x5e   :  { %v325_v21 = vsel %vm164_vm2, %v305_v45, %v324_v48  ;;  %v266_v44 = vadd.f32 %v265_v46, %v264_v39  ;;  %v272_v51 = vrot.slane %v271_v47, 4  ;;  %v279_v55 = vrot.slane %v1199_v14, 4 }
  0x5f   :  { %v312_v58 = vadd.f32 %v311_v27, %v310_v37  ;;  %v505_v60 = vadd.f32 %v504_v29, %v299_v30  ;;  %v1205_v5 = vmul.f32 %v1187_v23, %v1173_v54  ;;  %v260_v8 = vrot.slane %v259_v50, 2 }
  0x60   :  { %v267_v10 = vrot.slane %v266_v44, 2  ;;  %v273_v12 = vadd.f32 %v272_v51, %v271_v47  ;;  %v280_v22 = vadd.f32 %v279_v55, %v1199_v14  ;;  %v83_v32 = vmul.f32 %v1075_v52, %v1075_v52 }
  0x61   :  { %v644_v31 = vld [vmem:[#allocation2 + $0x4] sm:$0xf]  ;;  %v326_v24 = vsel %vm166_vm3, %v312_v58, %v325_v21  ;;  %v261_v26 = vadd.f32 %v260_v8, %v259_v50  ;;  %v84_v30 = vmul.f32 %v1080_v62, %v1080_v62  ;;  %v1215_v36 = vadd.f32 %v505_v60, %v1162_v41 }
  0x62   :  { %v649_v20 = vsel %vm645_vm4, %v644_v31, 0.0  ;;  %v330_v34 = vadd.f32 %v326_v24, %v256_v57  ;;  %v268_v25 = vadd.f32 %v267_v10, %v266_v44  ;;  %v274_v28 = vrot.slane %v273_v12, 2 }
  0x63   :  { %650 = vadd.xlane.f32.xlu0 %v649_v20  ;;  %v281_v29 = vrot.slane %v280_v22, 2  ;;  %v262_v37 = vrot.slane %v261_v26, 1  ;;  %v85_v38 = vmul.f32 %v1086_v13, %v1086_v13  ;;  %v86_v45 = vmul.f32 %v1088_v18, %v1088_v18  ;;  %v255_v20 = vld [vmem:[#allocation4] sm:$0xf] }
  0x64   :  { %332 = vst [vmem:[#allocation4 + $0x4] sm:$0xf] %v330_v34  ;;  %v269_v46 = vrot.slane %v268_v25, 1  ;;  %v275_v27 = vadd.f32 %v274_v28, %v273_v12  ;;  %v363_v50 = vsel %vm97_vm0, %v83_v32, 0.0  ;;  %v501_v44 = vadd.f32 %v264_v39, %v257_v33 }
  0x65   :  { %v282_v48 = vadd.f32 %v281_v29, %v280_v22  ;;  %v263_v21 = vadd.f32 %v262_v37, %v261_v26  ;;  %v364_v51 = vrot.slane %v363_v50, 4  ;;  %v370_v55 = vsel %vm97_vm0, %v84_v30, 0.0 }
  0x66   :  { %v270_v41 = vadd.f32 %v269_v46, %v268_v25  ;;  %v276_v57 = vrot.slane %v275_v27, 1  ;;  %v371_v60 = vrot.slane %v370_v55, 4  ;;  %v1225_v8 = vmul.f32 %v1194_v40, %v1117_v61 }
  0x67   :  { %v283_v58 = vrot.slane %v282_v48, 1  ;;  %v365_v31 = vadd.f32 %v364_v51, %v363_v50  ;;  %v377_v10 = vsel %vm97_vm0, %v85_v38, 0.0  ;;  %v384_v12 = vsel %vm97_vm0, %v86_v45, 0.0 }
  0x68   :  { %v277_v22 = vadd.f32 %v276_v57, %v275_v27  ;;  %v321_v33 = vsel %vm162_vm1, %v270_v41, %v263_v21  ;;  %v372_v39 = vadd.f32 %v371_v60, %v370_v55  ;;  %v502_v24 = vadd.f32 %v501_v44, %v271_v47 }
  0x69   :  { %v284_v32 = vadd.f32 %v283_v58, %v282_v48  ;;  %v366_v26 = vrot.slane %v365_v31, 2  ;;  %v378_v30 = vrot.slane %v377_v10, 4  ;;  %v385_v34 = vrot.slane %v384_v12, 4 }
  0x6a   :  { %v526_v25 = vsub.f32 %v1215_v36, %v1205_v5  ;;  %v322_v61 = vsel %vm164_vm2, %v277_v22, %v321_v33  ;;  %v373_v28 = vrot.slane %v372_v39, 2  ;;  %v510_v29 = vadd.f32 %v370_v55, %v363_v50 }
  0x6b   :  { %v661_v37 = vld [vmem:[#allocation4 + $0x4] sm:$0xf]  ;;  %v323_v38 = vsel %vm166_vm3, %v284_v32, %v322_v61  ;;  %v367_v45 = vadd.f32 %v366_v26, %v365_v31  ;;  %v379_v46 = vadd.f32 %v378_v30, %v377_v10  ;;  %v386_v27 = vadd.f32 %v385_v34, %v384_v12 }
  0x6c   :  { %v665_v48 = vsel %vm645_vm4, %v661_v37, 0.0  ;;  %v329_v21 = vadd.f32 %v323_v38, %v255_v20  ;;  %v374_v47 = vadd.f32 %v373_v28, %v372_v39  ;;  %v81_v44 = vmul.f32 %v1047_v3, %v1047_v3 }
  0x6d   :  { %666 = vadd.xlane.f32.xlu1 %v665_v48  ;;  %v503_v5 = vadd.f32 %v502_v24, %v1199_v14  ;;  %v368_v36 = vrot.slane %v367_v45, 1  ;;  %v380_v51 = vrot.slane %v379_v46, 2  ;;  %v387_v41 = vrot.slane %v386_v27, 2 }
  0x6e   :  { %331 = vst [vmem:[#allocation4] sm:$0xf] %v329_v21  ;;  %v375_v50 = vrot.slane %v374_v47, 1  ;;  %v82_v55 = vmul.f32 %v1049_v4, %v1049_v4  ;;  %v335_v57 = vsel %vm97_vm0, %v1142_v43, 0.0  ;;  %v342_v58 = vsel %vm97_vm0, %v1153_v59, 0.0 }
  0x6f   :  { %v369_v60 = vadd.f32 %v368_v36, %v367_v45  ;;  %v381_v31 = vadd.f32 %v380_v51, %v379_v46  ;;  %v388_v22 = vadd.f32 %v387_v41, %v386_v27  ;;  %v336_v32 = vrot.slane %v335_v57, 4  ;;  %v334_v27 = vld [vmem:[#allocation5 + $0x4] sm:$0xf] }
  0x70   :  { %v376_v33 = vadd.f32 %v375_v50, %v374_v47  ;;  %v511_v14 = vadd.f32 %v510_v29, %v377_v10  ;;  %v343_v39 = vrot.slane %v342_v58, 4  ;;  %v349_v20 = vsel %vm97_vm0, %v81_v44, 0.0 }
  0x71   :  { %v382_v24 = vrot.slane %v381_v31, 1  ;;  %v389_v26 = vrot.slane %v388_v22, 1  ;;  %v337_v30 = vadd.f32 %v336_v32, %v335_v57  ;;  %v350_v34 = vrot.slane %v349_v20, 4 }
  0x72   :  { %v525_v61 = vsub.f32 %v503_v5, %v1179_v6  ;;  %v402_v43 = vsel %vm162_vm1, %v376_v33, %v369_v60  ;;  %v344_v28 = vadd.f32 %v343_v39, %v342_v58  ;;  %v356_v59 = vsel %vm97_vm0, %v82_v55, 0.0 }
  0x73   :  { %v383_v37 = vadd.f32 %v382_v24, %v381_v31  ;;  %v390_v38 = vadd.f32 %v389_v26, %v388_v22  ;;  %v338_v45 = vrot.slane %v337_v30, 2  ;;  %v351_v46 = vadd.f32 %v350_v34, %v349_v20 }
  0x74   :  { %v512_v10 = vadd.f32 %v511_v14, %v384_v12  ;;  %v345_v29 = vrot.slane %v344_v28, 2  ;;  %v357_v48 = vrot.slane %v356_v59, 4  ;;  %v507_v21 = vadd.f32 %v342_v58, %v335_v57 }
  0x75   :  { %v1248_v47 = vmax.f32 %v526_v25, 0.0  ;;  %v660_v44 = vld [vmem:[#allocation4] sm:$0xf]  ;;  %v403_v36 = vsel %vm164_vm2, %v383_v37, %v402_v43  ;;  %v339_v6 = vadd.f32 %v338_v45, %v337_v30  ;;  %v352_v5 = vrot.slane %v351_v46, 2  ;;  %v333_v45 = vld [vmem:[#allocation5] sm:$0xf] }
  0x76   :  { %v527_v51 = vmax.f32 %v525_v61, 0.0  ;;  %v662_v41 = vsel %vm645_vm4, %v660_v44, 0.0  ;;  %v404_v50 = vsel %vm166_vm3, %v390_v38, %v403_v36  ;;  %v91_v55 = vmul.f32 %v1075_v52, %v1114_v56 }
  0x77   :  { %663 = vadd.xlane.f32.xlu0 %v662_v41  ;;  %v408_v12 = vadd.f32 %v404_v50, %v334_v27  ;;  %v340_v60 = vrot.slane %v339_v6, 1  ;;  %v346_v31 = vadd.f32 %v345_v29, %v344_v28  ;;  %v353_v57 = vadd.f32 %v352_v5, %v351_v46 }
  0x78   :  { %v534_v25 = vsub.f32 %v512_v10, %v1225_v8  ;;  %v358_v58 = vadd.f32 %v357_v48, %v356_v59  ;;  %v508_v22 = vadd.f32 %v507_v21, %v349_v20  ;;  %v92_v32 = vmul.f32 %v1080_v62, %v1119_v63 }
  0x79   :  { %410 = vst [vmem:[#allocation5 + $0x4] sm:$0xf] %v408_v12  ;;  %v341_v33 = vadd.f32 %v340_v60, %v339_v6  ;;  %v347_v14 = vrot.slane %v346_v31, 1  ;;  %v354_v39 = vrot.slane %v353_v57, 1  ;;  %v93_v24 = vmul.f32 %v1086_v13, %v1126_v9 }
  0x7a   :  { %v359_v52 = vrot.slane %v358_v58, 2  ;;  %v509_v56 = vadd.f32 %v508_v22, %v356_v59  ;;  %v94_v26 = vmul.f32 %v1088_v18, %v1128_v17  ;;  %v1263_v30 = vsel %vm97_vm0, %v91_v55, 0.0 }
  0x7b   :  { %v348_v8 = vadd.f32 %v347_v14, %v346_v31  ;;  %v355_v20 = vadd.f32 %v354_v39, %v353_v57  ;;  %v442_v34 = vrot.slane %v1263_v30, 4  ;;  %v1267_v62 = vsel %vm97_vm0, %v92_v32, 0.0 }
  0x7c   :  { %v360_v63 = vadd.f32 %v359_v52, %v358_v58  ;;  %v533_v61 = vsub.f32 %v509_v56, %v1170_v49  ;;  %v449_v13 = vrot.slane %v1267_v62, 4  ;;  %v1272_v9 = vsel %vm97_vm0, %v93_v24, 0.0 }
  0x7d   :  { %v399_v18 = vsel %vm162_vm1, %v348_v8, %v341_v33  ;;  %v443_v17 = vadd.f32 %v442_v34, %v1263_v30  ;;  %v456_v43 = vrot.slane %v1272_v9, 4  ;;  %v1278_v28 = vsel %vm97_vm0, %v94_v26, 0.0 }
  0x7e   :  { %v1280_v59 = vmul.f32 0.33333334, %v527_v51  ;;  %v361_v37 = vrot.slane %v360_v63, 1  ;;  %v535_v38 = vmax.f32 %v533_v61, 0.0  ;;  %v450_v49 = vadd.f32 %v449_v13, %v1267_v62 }
  0x7f   :  { %v400_v46 = vsel %vm164_vm2, %v355_v20, %v399_v18  ;;  %v444_v27 = vrot.slane %v443_v17, 2  ;;  %v457_v10 = vadd.f32 %v456_v43, %v1272_v9  ;;  %v463_v29 = vrot.slane %v1278_v28, 4 }
  0x80   :  { %v536_v48 = vmax.f32 %v534_v25, 0.0  ;;  %v669_v21 = vld [vmem:[#allocation5 + $0x4] sm:$0xf]  ;;  %v362_v44 = vadd.f32 %v361_v37, %v360_v63  ;;  %v1286_v36 = vmul.f32 0.33333334, %v535_v38  ;;  %v451_v6 = vrot.slane %v450_v49, 2 }
  0x81   :  { %v673_v5 = vsel %vm645_vm4, %v669_v21, 0.0  ;;  %v445_v51 = vadd.f32 %v444_v27, %v443_v17  ;;  %v458_v41 = vrot.slane %v457_v10, 2  ;;  %v464_v50 = vadd.f32 %v463_v29, %v1278_v28 }
  0x82   :  { %674 = vadd.xlane.f32.xlu1 %v673_v5  ;;  %v401_v55 = vsel %vm166_vm3, %v362_v44, %v400_v46  ;;  %v1293_v12 = vmul.f32 %v1286_v36, %v1280_v59  ;;  %v1297_v60 = vadd.f32 %v1286_v36, %v1280_v59  ;;  %v452_v31 = vadd.f32 %v451_v6, %v450_v49 }
  0x83   :  { %v407_v57 = vadd.f32 %v401_v55, %v333_v45  ;;  %v446_v25 = vrot.slane %v445_v51, 1  ;;  %v459_v58 = vadd.f32 %v458_v41, %v457_v10  ;;  %v465_v22 = vrot.slane %v464_v50, 2 }
  0x84   :  { %v1300_v32 = vmul.f32 0.33333334, %v1248_v47  ;;  %v453_v33 = vrot.slane %v452_v31, 1  ;;  %v87_v14 = vmul.f32 %v1043_v1, %v1059_v11  ;;  %v88_v56 = vmul.f32 %v1045_v2, %v1061_v15  ;;  %v412_v2 = vld [vmem:[#allocation6 + $0x4] sm:$0xf] }
  0x85   :  { %409 = vst [vmem:[#allocation5] sm:$0xf] %v407_v57  ;;  %v447_v39 = vadd.f32 %v446_v25, %v445_v51  ;;  %v460_v24 = vrot.slane %v459_v58, 1  ;;  %v466_v52 = vadd.f32 %v465_v22, %v464_v50  ;;  %v1306_v26 = vmul.f32 0.33333334, %v536_v48 }
  0x86   :  { %v454_v8 = vadd.f32 %v453_v33, %v452_v31  ;;  %v89_v20 = vmul.f32 %v1047_v3, %v1063_v16  ;;  %v90_v47 = vmul.f32 %v1049_v4, %v1073_v42  ;;  %v413_v1 = vsel %vm97_vm0, %v87_v14, 0.0 }
  0x87   :  { %v461_v34 = vadd.f32 %v460_v24, %v459_v58  ;;  %v467_v63 = vrot.slane %v466_v52, 1  ;;  %v420_v11 = vsel %vm97_vm0, %v88_v56, 0.0  ;;  %v414_v13 = vrot.slane %v413_v1, 4 }
  0x88   :  { %v480_v61 = vsel %vm162_vm1, %v454_v8, %v447_v39  ;;  %v421_v18 = vrot.slane %v420_v11, 4  ;;  %v427_v43 = vsel %vm97_vm0, %v89_v20, 0.0  ;;  %v434_v3 = vsel %vm97_vm0, %v90_v47, 0.0 }
  0x89   :  { %v468_v15 = vadd.f32 %v467_v63, %v466_v52  ;;  %v481_v17 = vsel %vm164_vm2, %v461_v34, %v480_v61  ;;  %v546_v4 = vmin.f32 %v1187_v23, %v1194_v40  ;;  %v415_v16 = vadd.f32 %v414_v13, %v413_v1  ;;  %v411_v63 = vld [vmem:[#allocation6] sm:$0xf] }
  0x8a   :  { %v422_v42 = vadd.f32 %v421_v18, %v420_v11  ;;  %v428_v37 = vrot.slane %v427_v43, 4  ;;  %v1322_v38 = vmul.f32 %v1306_v26, %v1300_v32  ;;  %v435_v45 = vrot.slane %v434_v3, 4 }
  0x8b   :  { %v482_v49 = vsel %vm166_vm3, %v468_v15, %v481_v17  ;;  %v513_v46 = vadd.f32 %v420_v11, %v413_v1  ;;  %v416_v29 = vrot.slane %v415_v16, 2  ;;  %v606_v44 = vadd.f32 %v1306_v26, %v1300_v32 }
  0x8c   :  { %v668_v27 = vld [vmem:[#allocation5] sm:$0xf]  ;;  %v486_v10 = vadd.f32 %v482_v49, %v412_v2  ;;  %v423_v48 = vrot.slane %v422_v42, 2  ;;  %v429_v21 = vadd.f32 %v428_v37, %v427_v43  ;;  %v436_v5 = vadd.f32 %v435_v45, %v434_v3 }
  0x8d   :  { %v670_v6 = vsel %vm645_vm4, %v668_v27, 0.0  ;;  %v514_v51 = vadd.f32 %v513_v46, %v427_v43  ;;  %v417_v41 = vadd.f32 %v416_v29, %v415_v16  ;;  %v551_v31 = vsub.f32 %v1093_v19, %v1112_v53 }
  0x8e   :  { %671 = vadd.xlane.f32.xlu0 %v670_v6  ;;  %488 = vst [vmem:[#allocation6 + $0x4] sm:$0xf] %v486_v10  ;;  %v424_v50 = vadd.f32 %v423_v48, %v422_v42  ;;  %v430_v55 = vrot.slane %v429_v21, 2  ;;  %v437_v57 = vrot.slane %v436_v5, 2  ;;  %v866_v58 = vadd.f32 -0.1, %v546_v4 }
  0x8f   :  { %v515_v25 = vadd.f32 %v514_v51, %v434_v3  ;;  %884 = vrsqrt.f32 %v1293_v12  ;;  %v516_v22 = vadd.f32 %v1267_v62, %v1263_v30  ;;  %v418_v33 = vrot.slane %v417_v41, 1 }
  0x90   :  { %v425_v14 = vrot.slane %v424_v50, 1  ;;  %v431_v39 = vadd.f32 %v430_v55, %v429_v21  ;;  %v597_v24 = vmul.f32 %v1124_v7, %v1124_v7  ;;  %v438_v52 = vadd.f32 %v437_v57, %v436_v5 }
  0x91   :  { %v541_v56 = vsub.f32 %v515_v25, %v1107_v35  ;;  %v419_v8 = vadd.f32 %v418_v33, %v417_v41  ;;  %886 = vrsqrt.f32 %v1322_v38  ;;  %v608_v53 = vadd.f32 1e-05, %v606_v44 }
  0x92   :  { %v426_v20 = vadd.f32 %v425_v14, %v424_v50  ;;  %v432_v19 = vrot.slane %v431_v39, 1  ;;  %v1339_v47 = vmul.f32 %v1194_v40, %v1173_v54  ;;  %v439_v30 = vrot.slane %v438_v52, 1 }
  0x93   :  { %v550_v62 = vsub.f32 %v1187_v23, %v866_v58  ;;  %v517_v34 = vadd.f32 %v516_v22, %v1272_v9  ;;  %vm569_vm5 = vcmp.eq.f32.partialorder %v1280_v59, 0.0  ;;  %v607_v35 = vadd.f32 1e-05, %v1297_v60 }
  0x94   :  { %v433_v1 = vadd.f32 %v432_v19, %v431_v39  ;;  %v477_v11 = vsel %vm162_vm1, %v426_v20, %v419_v8  ;;  %v440_v13 = vadd.f32 %v439_v30, %v438_v52  ;;  %v552_v18 = vsub.f32 %v1194_v40, %v866_v58 }
  0x95   :  { %v677_v61 = vld [vmem:[#allocation6 + $0x4] sm:$0xf]  ;;  %vm571_vm6 = vcmp.eq.f32.partialorder %v1286_v36, 0.0  ;;  %v543_v2 = vmul.f32 0.33333334, %v541_v56  ;;  %v579_v9 = vmul.f32 2.0, %v1124_v7  ;;  %v598_v60 = vmul.f32 %v550_v62, %v550_v62 }
  0x96   :  { %v681_v54 = vsel %vm645_vm4, %v677_v61, 0.0  ;;  %v478_v23 = vsel %vm164_vm2, %v433_v1, %v477_v11  ;;  %vm573_vm7 = vmand %vm569_vm5, %vm571_vm6  ;;  %v599_v17 = vmul.f32 %v551_v31, %v551_v31  ;;  %v518_v43 = vadd.f32 %v517_v34, %v1278_v28 }
  0x97   :  { %682 = vadd.xlane.f32.xlu1 %v681_v54  ;;  %v479_v15 = vsel %vm166_vm3, %v440_v13, %v478_v23  ;;  %v867_v59 = vsel %vm573_vm7, 1.0, %v988_v0  ;;  %vm557_vm8 = vcmp.eq.f32.partialorder %v1293_v12, inf  ;;  %v581_v36 = vmul.f32 %v579_v9, %v551_v31 }
  0x98   :  { %v485_v40 = vadd.f32 %v479_v15, %v411_v63  ;;  %v560_v4 = vand.u32 2147483648, %v1293_v12  ;;  %v591_v16 = vmul.f32 5e-06, %v867_v59  ;;  %v600_v42 = vmul.f32 %v552_v18, %v552_v18 }
  0x99   :  { %v885_v3 = vpop.eup %884  ;;  %v601_v37 = vadd.f32 %v599_v17, %v597_v24  ;;  %vm559_vm9 = vcmp.eq.f32.partialorder %v1293_v12, 0.0  ;;  %vm564_vm10 = vcmp.eq.f32.partialorder %v1322_v38, inf  ;;  %vm570_vm11 = vcmp.eq.f32.partialorder %v1300_v32, 0.0  ;;  %v619_v17 = vld [vmem:[#allocation7] sm:$0x3] }
  0x9a   :  { %487 = vst [vmem:[#allocation6] sm:$0xf] %v485_v40  ;;  %v556_v7 = vmul.f32 %v885_v3, %v1293_v12  ;;  %vm572_vm12 = vcmp.eq.f32.partialorder %v1306_v26, 0.0  ;;  %v593_v28 = vadd.f32 %v591_v16, %v543_v2  ;;  %v602_v49 = vadd.f32 %v600_v42, %v598_v60 }
  0x9b   :  { %v603_v45 = vadd.f32 1e-05, %v601_v37  ;;  %v887_v46 = vpop.eup %886  ;;  %vm566_vm13 = vcmp.eq.f32.partialorder %v1322_v38, 0.0  ;;  %v567_v10 = vand.u32 2147483648, %v1322_v38  ;;  %v580_v29 = vmul.f32 2.0, %v550_v62  ;;  %vm574_vm14 = vmand %vm570_vm11, %vm572_vm12 }
  0x9c   :  { %v558_v27 = vsel %vm557_vm8, %v1293_v12, %v556_v7  ;;  %v563_v21 = vmul.f32 %v887_v46, %v1322_v38  ;;  %v604_v44 = vadd.f32 1e-05, %v602_v49  ;;  %v583_v26 = vadd.f32 1e-05, %v581_v36 }
  0x9d   :  { %v561_v48 = vsel %vm559_vm9, %v560_v4, %v558_v27  ;;  %v609_v32 = vmul.f32 %v607_v35, %v603_v45  ;;  %v542_v51 = vsub.f32 %v518_v43, %v1339_v47  ;;  %v582_v55 = vmul.f32 %v580_v29, %v552_v18 }
  0x9e   :  { %v585_v6 = vmul.f32 2.0, %v561_v48  ;;  %v611_v5 = vadd.f32 5e-06, %v561_v48  ;;  %v565_v12 = vsel %vm564_vm10, %v1322_v38, %v563_v21  ;;  %v610_v41 = vmul.f32 %v608_v53, %v604_v44 }
  0x9f   :  { %v568_v50 = vsel %vm566_vm13, %v567_v10, %v565_v12  ;;  %v868_v58 = vsel %vm574_vm14, 1.0, %v988_v0  ;;  %v544_v24 = vmul.f32 0.33333334, %v542_v51  ;;  %v584_v56 = vadd.f32 1e-05, %v582_v55 }
  0xa0   :  { %v587_v31 = vadd.f32 1e-05, %v585_v6  ;;  %v613_v57 = vmul.f32 %v611_v5, %v609_v32  ;;  %v586_v22 = vmul.f32 2.0, %v568_v50  ;;  %v612_v33 = vadd.f32 5e-06, %v568_v50 }
  0xa1   :  { %v676_v25 = vld [vmem:[#allocation6] sm:$0xf]  ;;  %v592_v38 = vmul.f32 5e-06, %v868_v58  ;;  %v989_v16 = vmov 0   ;;  %v810_v42 = vlaneseq  ;;  %vm844_vm13 = vcmask 24576  }
  0xa2   :  { %v678_v14 = vsel %vm645_vm4, %v676_v25, 0.0  ;;  %v589_v39 = vmul.f32 %v587_v31, %v583_v26  ;;  %888 = vrcp.f32 %v613_v57  ;;  %v614_v52 = vmul.f32 %v612_v33, %v610_v41  ;;  %883 = vset.pattern.permute.xlu0 %v989_v16  ;;  %882 = vset.pattern.permute.xlu1 %v989_v16 }
  0xa3   :  { %679 = vadd.xlane.f32.xlu0 %v678_v14  ;;  %v588_v8 = vadd.f32 1e-05, %v586_v22  ;;  %v594_v53 = vadd.f32 %v592_v38, %v544_v24  ;;  %v1377_v37 = vshrl.u32 %v810_v42, 7  ;;  %v833_v7 = vand.u32 127, %v810_v42 }
  0xa4   :  { %v595_v20 = vmul.f32 %v593_v28, %v589_v39  ;;  %890 = vrcp.f32 %v614_v52 }
  0xa5   :  { %v590_v19 = vmul.f32 %v588_v8, %v584_v56  ;;  %v1380_v28 = vsub.s32 %v833_v7, %v1377_v37 }
  0xa7   :  { %v596_v30 = vmul.f32 %v594_v53, %v590_v19 }
  0xac   :  { %v889_v47 = vpop.eup %888 }
  0xad   :  { %v616_v62 = vmul.f32 %v889_v47, %v595_v20 }
  0xae   :  { %v891_v34 = vpop.eup %890 }
  0xaf   :  { %v620_v63 = vsel %vm97_vm0, %v616_v62, 0.0  ;;  %v618_v1 = vmul.f32 %v891_v34, %v596_v30 }
  0xb0   :  { %v621_v11 = vrot.slane %v620_v63, 4 }
  0xb1   :  { %v627_v61 = vsel %vm97_vm0, %v618_v1, 0.0 }
  0xb2   :  { %v622_v35 = vadd.f32 %v621_v11, %v620_v63  ;;  %v628_v13 = vrot.slane %v627_v61, 4 }
  0xb4   :  { %v623_v18 = vrot.slane %v622_v35, 2  ;;  %v629_v54 = vadd.f32 %v628_v13, %v627_v61 }
  0xb6   :  { %v624_v23 = vadd.f32 %v623_v18, %v622_v35  ;;  %v630_v2 = vrot.slane %v629_v54, 2 }
  0xb8   :  { %v625_v9 = vrot.slane %v624_v23, 1  ;;  %v631_v15 = vadd.f32 %v630_v2, %v629_v54 }
  0xba   :  { %v626_v59 = vadd.f32 %v625_v9, %v624_v23  ;;  %v632_v60 = vrot.slane %v631_v15, 1 }
  0xbc   :  { %v633_v43 = vadd.f32 %v632_v60, %v631_v15 }
  0xbe   :  { %v636_v40 = vsel %vm162_vm1, %v633_v43, %v626_v59 }
  0xbf   :  { %v638_v36 = vadd.f32 %v636_v40, %v619_v17 }
  0xc1   :  { %639 = vst [vmem:[#allocation7] sm:$0x3] %v638_v36 }
  0xc8   :  { %v804_v3 = vld [vmem:[#allocation7] sm:$0x3] }
  0xc9   :  { %v805_v4 = vsel %vm97_vm0, %v804_v3, 0.0 }
  0xca   :  { %806 = vadd.xlane.f32.xlu0 %v805_v4 }
  0xd3   :  { %v656_v49 = vpop.xlane.xlu1 %655 }
  0xd4   :  { %v1389_v44 = vmul.f32 0.00390625, %v656_v49 }
  0xd6   :  { %v696_v51 = vmul.f32 %v1389_v44, %v656_v49 }
  0xdd   :  { %v1382_v45 = vpop.xlane.xlu0 %647 }
  0xde   :  { %v684_v32 = vmul.f32 0.00390625, %v1382_v45 }
  0xe0   :  { %v688_v50 = vmul.f32 %v684_v32, %v1382_v45  ;;  %v738_v56 = vmin.f32 %v684_v32, %v1389_v44 }
  0xe2   :  { %v869_v38 = vadd.f32 -0.1, %v738_v56 }
  0xe4   :  { %v742_v19 = vsub.f32 %v684_v32, %v869_v38  ;;  %v1399_v53 = vsub.f32 %v1389_v44, %v869_v38 }
  0xe5   :  { %v659_v46 = vpop.xlane.xlu1 %658 }
  0xe6   :  { %v1386_v48 = vmul.f32 0.00390625, %v659_v46  ;;  %v752_v11 = vmul.f32 %v742_v19, %v742_v19  ;;  %v754_v35 = vmul.f32 %v1399_v53, %v1399_v53 }
  0xe8   :  { %v697_v6 = vmul.f32 %v1386_v48, %v659_v46  ;;  %v756_v9 = vadd.f32 %v754_v35, %v752_v11 }
  0xf0   :  { %v1384_v27 = vpop.xlane.xlu0 %650 }
  0xf1   :  { %v685_v21 = vmul.f32 0.00390625, %v1384_v27 }
  0xf3   :  { %v689_v5 = vmul.f32 %v685_v21, %v1384_v27  ;;  %v739_v8 = vmin.f32 %v685_v21, %v1386_v48 }
  0xf5   :  { %v870_v20 = vadd.f32 -0.1, %v739_v8 }
  0xf7   :  { %v743_v30 = vsub.f32 %v685_v21, %v870_v20  ;;  %v1402_v62 = vsub.f32 %v1386_v48, %v870_v20 }
  0xf9   :  { %v753_v13 = vmul.f32 %v743_v30, %v743_v30  ;;  %v755_v18 = vmul.f32 %v1402_v62, %v1402_v62 }
  0xfa   :  { %v667_v10 = vpop.xlane.xlu1 %666 }
  0xfb   :  { %v691_v31 = vsub.f32 %v667_v10, %v689_v5  ;;  %v757_v59 = vadd.f32 %v755_v18, %v753_v13  ;;  %v758_v10 = vadd.f32 1e-05, %v756_v9  ;;  %v812_v9 = vsub.s32 0, %v1377_v37 }
  0xfd   :  { %v693_v22 = vmax.f32 %v691_v31, 0.0  ;;  %v759_v32 = vadd.f32 1e-05, %v757_v59  ;;  %v747_v31 = vmul.f32 2.0, %v743_v30 }
  0xff   :  { %v695_v24 = vmul.f32 0.003921569, %v693_v22  ;;  %v705_v22 = vmul.f32 %v1386_v48, %v1384_v27 }
 0x101   :  { %vm719_vm1 = vcmp.eq.f32.partialorder %v695_v24, inf  ;;  %v722_v3 = vand.u32 2147483648, %v695_v24  ;;  %vm721_vm5 = vcmp.eq.f32.partialorder %v695_v24, 0.0 }
 0x104   :  { %v664_v29 = vpop.xlane.xlu0 %663 }
 0x105   :  { %v690_v57 = vsub.f32 %v664_v29, %v688_v50 }
 0x107   :  { %v692_v33 = vmax.f32 %v690_v57, 0.0 }
 0x109   :  { %v694_v52 = vmul.f32 0.003921569, %v692_v33  ;;  %v704_v33 = vmul.f32 %v1389_v44, %v1382_v45 }
 0x10b   :  { %vm712_vm3 = vcmp.eq.f32.partialorder %v694_v52, inf  ;;  %v715_v16 = vand.u32 2147483648, %v694_v52  ;;  %vm714_vm6 = vcmp.eq.f32.partialorder %v694_v52, 0.0 }
 0x10f   :  { %v675_v26 = vpop.xlane.xlu1 %674 }
 0x110   :  { %v699_v41 = vsub.f32 %v675_v26, %v697_v6 }
 0x112   :  { %v701_v25 = vmax.f32 %v699_v41, 0.0 }
 0x114   :  { %v703_v14 = vmul.f32 0.003921569, %v701_v25 }
 0x116   :  { %892 = vrsqrt.f32 %v703_v14  ;;  %vm733_vm15 = vcmp.eq.f32.partialorder %v703_v14, inf  ;;  %v736_v60 = vand.u32 2147483648, %v703_v14  ;;  %vm735_vm2 = vcmp.eq.f32.partialorder %v703_v14, 0.0 }
 0x117   :  { %v771_v7 = vadd.f32 %v703_v14, %v695_v24 }
 0x119   :  { %v773_v6 = vadd.f32 1e-05, %v771_v7 }
 0x11b   :  { %v672_v12 = vpop.xlane.xlu0 %671 }
 0x11c   :  { %v698_v55 = vsub.f32 %v672_v12, %v696_v51 }
 0x11e   :  { %v700_v58 = vmax.f32 %v698_v55, 0.0  ;;  %v746_v55 = vmul.f32 2.0, %v742_v19  ;;  %v749_v19 = vmul.f32 %v747_v31, %v1402_v62 }
 0x120   :  { %v702_v39 = vmul.f32 0.003921569, %v700_v58  ;;  %v893_v47 = vpop.eup %892  ;;  %v748_v20 = vmul.f32 %v746_v55, %v1399_v53  ;;  %v751_v35 = vadd.f32 1e-05, %v749_v19 }
 0x121   :  { %v732_v61 = vmul.f32 %v893_v47, %v703_v14 }
 0x122   :  { %894 = vrsqrt.f32 %v702_v39  ;;  %vm726_vm0 = vcmp.eq.f32.partialorder %v702_v39, inf  ;;  %v729_v40 = vand.u32 2147483648, %v702_v39  ;;  %vm728_vm4 = vcmp.eq.f32.partialorder %v702_v39, 0.0 }
 0x123   :  { %896 = vrsqrt.f32 %v695_v24  ;;  %v734_v15 = vsel %vm733_vm15, %v703_v14, %v732_v61  ;;  %v770_v46 = vadd.f32 %v702_v39, %v694_v52 }
 0x124   :  { %898 = vrsqrt.f32 %v694_v52  ;;  %v737_v36 = vsel %vm735_vm2, %v736_v60, %v734_v15  ;;  %v683_v57 = vpop.xlane.xlu1 %682  ;;  %v816_v15 = vsub.s32 1, %v1377_v37 }
 0x125   :  { %v772_v5 = vadd.f32 1e-05, %v770_v46  ;;  %900 = vrcp.f32 %v758_v10  ;;  %vm781_vm7 = vcmp.le.f32.partialorder %v737_v36, 0.0  ;;  %v707_v56 = vsub.f32 %v683_v57, %v705_v22 }
 0x126   :  { %902 = vrcp.f32 %v759_v32 }
 0x127   :  { %904 = vrcp.f32 %v773_v6  ;;  %v709_v44 = vmul.f32 0.003921569, %v707_v56 }
 0x128   :  { %906 = vrcp.f32 %v772_v5 }
 0x12c   :  { %v895_v34 = vpop.eup %894 }
 0x12d   :  { %v897_v63 = vpop.eup %896  ;;  %v725_v54 = vmul.f32 %v895_v34, %v702_v39 }
 0x12e   :  { %v899_v1 = vpop.eup %898  ;;  %v718_v23 = vmul.f32 %v897_v63, %v695_v24 }
 0x12f   :  { %v711_v2 = vmul.f32 %v899_v1, %v694_v52  ;;  %v727_v17 = vsel %vm726_vm0, %v702_v39, %v725_v54 }
 0x130   :  { %v720_v43 = vsel %vm719_vm1, %v695_v24, %v718_v23  ;;  %v730_v42 = vsel %vm728_vm4, %v729_v40, %v727_v17  ;;  %v680_v58 = vpop.xlane.xlu0 %679 }
 0x131   :  { %v713_v4 = vsel %vm712_vm3, %v694_v52, %v711_v2  ;;  %v723_v49 = vsel %vm721_vm5, %v722_v3, %v720_v43  ;;  %vm780_vm8 = vcmp.le.f32.partialorder %v730_v42, 0.0  ;;  %v901_v52 = vpop.eup %900  ;;  %v706_v8 = vsub.f32 %v680_v58, %v704_v33 }
 0x132   :  { %v793_v29 = vmul.f32 %v737_v36, %v723_v49  ;;  %v716_v21 = vsel %vm714_vm6, %v715_v16, %v713_v4  ;;  %vm779_vm9 = vcmp.le.f32.partialorder %v723_v49, 0.0  ;;  %v765_v41 = vmul.f32 2.0, %v723_v49  ;;  %v903_v38 = vpop.eup %902 }
 0x133   :  { %v792_v26 = vmul.f32 %v730_v42, %v716_v21  ;;  %vm783_vm10 = vmand %vm779_vm9, %vm781_vm7  ;;  %vm778_vm11 = vcmp.le.f32.partialorder %v716_v21, 0.0  ;;  %v764_v50 = vmul.f32 2.0, %v716_v21  ;;  %v905_v30 = vpop.eup %904  ;;  %v708_v1 = vmul.f32 0.003921569, %v706_v8 }
 0x134   :  { %v795_v51 = vadd.f32 5e-06, %v793_v29  ;;  %vm782_vm12 = vmand %vm778_vm11, %vm780_vm8  ;;  %v767_v25 = vmul.f32 %v765_v41, %v737_v36  ;;  %v872_v39 = vsel %vm783_vm10, 1.0, %v988_v0  ;;  %v907_v63 = vpop.eup %906  ;;  %v763_v2 = vmul.f32 %v903_v38, %v751_v35 }
 0x135   :  { %v794_v12 = vadd.f32 5e-06, %v792_v26  ;;  %v766_v14 = vmul.f32 %v764_v50, %v730_v42  ;;  %v871_v24 = vsel %vm782_vm12, 1.0, %v988_v0  ;;  %v789_v34 = vmul.f32 5e-06, %v872_v39 }
 0x136   :  { %908 = vrcp.f32 %v795_v51  ;;  %v769_v47 = vadd.f32 1e-05, %v767_v25  ;;  %v788_v48 = vmul.f32 5e-06, %v871_v24  ;;  %v750_v0 = vadd.f32 1e-05, %v748_v20 }
 0x137   :  { %910 = vrcp.f32 %v794_v12  ;;  %v768_v27 = vadd.f32 1e-05, %v766_v14  ;;  %v791_v61 = vadd.f32 %v789_v34, %v709_v44 }
 0x138   :  { %v790_v13 = vadd.f32 %v788_v48, %v708_v1  ;;  %v777_v18 = vmul.f32 %v905_v30, %v769_v47  ;;  %v761_v62 = vmul.f32 %v901_v52, %v750_v0 }
 0x139   :  { %v775_v54 = vmul.f32 %v907_v63, %v768_v27 }
 0x13a   :  { %v801_v59 = vmul.f32 %v777_v18, %v763_v2 }
 0x13b   :  { %v800_v60 = vmul.f32 %v775_v54, %v761_v62 }
 0x140   :  { %v909_v45 = vpop.eup %908 }
 0x141   :  { %v911_v11 = vpop.eup %910  ;;  %v799_v23 = vmul.f32 %v909_v45, %v791_v61 }
 0x142   :  { %v797_v53 = vmul.f32 %v911_v11, %v790_v13 }
 0x143   :  { %v803_v40 = vmul.f32 %v801_v59, %v799_v23 }
 0x144   :  { %v802_v36 = vmul.f32 %v800_v60, %v797_v53 }
 0x157   :  { %v807_v17 = vpop.xlane.xlu0 %806 }
 0x158   :  { %v808_v43 = vmul.f32 0.00390625, %v807_v17 }
 0x15a   :  { %v813_v3 = vrot.slane %v808_v43, %v812_v9  ;;  %v817_v4 = vrot.slane %v808_v43, %v816_v15 }
 0x15c   :  { %v821_v16 = vadd.f32 %v817_v4, %v803_v40  ;;  %v820_v42 = vadd.f32 %v813_v3, %v802_v36 }
 0x15e   :  { %v823_v7 = vmul.f32 0.5, %v821_v16  ;;  %v822_v49 = vmul.f32 0.5, %v820_v42 }
 0x160   :  { %830 = vperm.xlu0 %883, %v823_v7   ;;  %827 = vperm.xlu1 %882, %v822_v49  }
 0x1df   :  { %v831_v46 = vpop.permute.xlu0 %830  ;;  %v828_v10 = vpop.permute.xlu1 %827 }
 0x1e0   :  { %v841_v37 = vrot.slane %v831_v46, %v1380_v28  ;;  %v837_v29 = vrot.slane %v828_v10, %v1380_v28 }
 0x1e2   :  { %846 = vst.msk [vmem:[#allocation13 + $0x1] sm:$0x1] %vm844_vm13, %v841_v37  ;;  %845 = vst.msk [vmem:[#allocation13] sm:$0x1] %vm844_vm13, %v837_v29 }
 0x1e3   :  { %967 = shalt.err (!%p964_p6)
}
 0x1e4   :  { %s968_s10 = scalar_lea.hbm %s1434_s2, 32 }
 0x1e5   :  { %p969_p7 = scmp.ne.s32.totalorder %s1434_s2, %s968_s10  ;;  %p972_p8 = scmp.lt.u32.totalorder %s968_s10, %s1434_s2 }
 0x1e7   :  { %p974_p9 = pnand %p972_p8, %p969_p7 }
 0x1e9   :  { %977 = shalt.err (!%p974_p9)
}
 0x1ea   :  { %s991_s15 = smov 16   ;;  %s992_s16 = smov 1  }
 0x1eb   :  { %858 = dma.vmem_to_hbm [thread:$0]  %s853_s6, 32, %s1434_s2, [#allocation10], %s991_s15, %s991_s15, %s992_s16  }
 0x1ec   :  { %982 = dma.done.wait [#allocation10], 32  }
 0x1ed   :  { %983 = vsyncadd [#allocation10], 4294967264 }
 0x1ee   :  { %862 = vsyncpa [#allocation9], 1 }
 0x1ef   :  { %863 = vsyncpa [#allocation12], 1 }
 0x1f0   :  { %864 = vsyncpa [#allocation10], 1 }

</bundles_post_ra>
